<compile_context>
chip_gen: v5e
topology: v5e:2x2
jax: 0.10.0
libtpu: 0.0.40
codegen_flags: <defaults>
</compile_context>

<pallas_src>
import functools

import jax
import jax.numpy as jnp
from jax.experimental import pallas as pl
from jax.experimental.pallas import tpu as pltpu


# ----------------------------------------------------------------------------
# Helpers
# ----------------------------------------------------------------------------
def _round_up(a, b):
    return (a + b - 1) // b * b


def _fold_bn_into_weight(w2, bias, bn, repeat=1):
    """Fold eval-mode BN into the GEMM weight; bf16 weight + f32 shift column.

    `repeat` replicates the per-channel scale/shift along the row axis (used by the
    sub-pixel deconv whose rows are ordered (channel, parity))."""
    w2 = w2.astype(jnp.float32)
    bias = bias.astype(jnp.float32)
    if bn is None:
        scale = jnp.ones_like(bias)
        shift = bias
    else:
        scale = bn["gamma"] / jnp.sqrt(bn["var"] + bn["eps"])
        shift = bn["beta"] + scale * (bias - bn["mean"])
    if repeat > 1:
        scale = jnp.repeat(scale, repeat)
        shift = jnp.repeat(shift, repeat)
    w_folded = (w2 * scale[:, None]).astype(jnp.bfloat16)
    return w_folded, shift.reshape(-1, 1).astype(jnp.float32)


def _pick_tile(M, tm_cap=2048):
    """Pad M to a 128 multiple; pick tm that divides M_pad exactly.

    * no padding beyond the 128 round-up (fixes 2176 -> 4096 style ~2x waste)
    * grid >= 2 whenever M_pad >= 256 so v7x can shard the parallel axis on both TCs
    * tm <= tm_cap bounds the per-buffer x tile (K * tm * 2 bytes, bf16)."""
    M_pad = _round_up(M, 128)
    n = M_pad // 128                      # number of 128-lane blocks
    if n == 1:
        return M_pad, M_pad
    min_tiles = max(2, -(-M_pad // tm_cap))
    g = n                                 # fallback: 128-wide tiles
    for cand in range(min_tiles, n + 1):
        if n % cand == 0:
            g = cand
            break
    return M_pad, M_pad // g


_COMPILER_PARAMS = pltpu.CompilerParams(
    dimension_semantics=("parallel",),
    # Worst-case x tile here is K<=432 x tm<=2048 bf16 (~1.7 MiB) -> 32 MiB scoped VMEM is
    # safe on v5e/v6e/v7x.  At real-scale K/tm, re-derive per generation (<=48-56 MiB v7x).
    vmem_limit_bytes=32 * 1024 * 1024,
)


# ----------------------------------------------------------------------------
# Pallas kernels
# ----------------------------------------------------------------------------
def _gemm_bias_act_kernel(w_ref, x_ref, shift_ref, o_ref, *, activation):
    # (N, K) @ (K, tm) on the MXU, bf16 inputs, f32 accumulation + fused epilogue.
    y = jnp.dot(w_ref[...], x_ref[...], preferred_element_type=jnp.float32)
    y = y + shift_ref[...]                        # BN scale already folded into weights
    if activation == "relu":
        y = jnp.maximum(y, 0.0)
    elif activation == "elu":
        y = jnp.where(y > 0.0, y, jnp.exp(jnp.minimum(y, 0.0)) - 1.0)
    elif activation == "sigmoid":
        y = pl.reciprocal(1.0 + jnp.exp(-y), approx=True)
    o_ref[...] = y.astype(o_ref.dtype)


def _deconv_final_kernel(w_ref, x_ref, shift_ref, w4_ref, b4_ref, o_ref):
    # Sub-pixel d3 GEMM (rows ordered (channel, parity)) + BN shift + ReLU, then the fused
    # d4 1x1x1 conv combining the two channels per parity + sigmoid (EUP approx reciprocal).
    h = jnp.dot(w_ref[...], x_ref[...], preferred_element_type=jnp.float32)   # (16, tm)
    h = jnp.maximum(h + shift_ref[...], 0.0)
    g = h[0:8, :] * w4_ref[0] + h[8:16, :] * w4_ref[1] + b4_ref[0]            # (8, tm)
    o_ref[...] = pl.reciprocal(1.0 + jnp.exp(-g), approx=True)


# ----------------------------------------------------------------------------
# Pallas call wrappers
# ----------------------------------------------------------------------------
def gemm_bias_act(w2, x_km, shift, activation, out_dtype=jnp.bfloat16):
    """out(N, M) = w2(N, K) @ x_km(K, M), fused BN-shift + activation, lane-dense stores."""
    N, K = w2.shape
    K2, M = x_km.shape
    assert K == K2, (K, K2)
    M_pad, tm = _pick_tile(M)
    if M_pad != M:
        x_km = jnp.pad(x_km, ((0, 0), (0, M_pad - M)))
    grid = M_pad // tm
    x_kwargs = {"pipeline_mode": pl.Buffered(3)} if grid >= 3 else {}
    kernel = functools.partial(_gemm_bias_act_kernel, activation=activation)
    out = pl.pallas_call(
        kernel,
        out_shape=jax.ShapeDtypeStruct((N, M_pad), out_dtype),
        grid=(grid,),
        in_specs=[
            pl.BlockSpec((N, K), lambda i: (0, 0)),
            pl.BlockSpec((K, tm), lambda i: (0, i), **x_kwargs),
            pl.BlockSpec((N, 1), lambda i: (0, 0)),
        ],
        out_specs=pl.BlockSpec((N, tm), lambda i: (0, i)),
        compiler_params=_COMPILER_PARAMS,
    )(w2, x_km, shift)
    return out[:, :M] if M_pad != M else out


def gemm_final_fused(w2, x_km, shift, w4_s, b4_s):
    """Sub-pixel d3 GEMM with fused BN/ReLU + 1x1x1 conv + sigmoid.  Returns (8, M) f32."""
    N, K = w2.shape
    assert N == 16, N                      # 2 channels x 8 parities, rows = (channel, parity)
    _, M = x_km.shape
    M_pad, tm = _pick_tile(M)
    if M_pad != M:
        x_km = jnp.pad(x_km, ((0, 0), (0, M_pad - M)))
    grid = M_pad // tm
    x_kwargs = {"pipeline_mode": pl.Buffered(3)} if grid >= 3 else {}
    out = pl.pallas_call(
        _deconv_final_kernel,
        out_shape=jax.ShapeDtypeStruct((8, M_pad), jnp.float32),
        grid=(grid,),
        in_specs=[
            pl.BlockSpec((N, K), lambda i: (0, 0)),
            pl.BlockSpec((K, tm), lambda i: (0, i), **x_kwargs),
            pl.BlockSpec((N, 1), lambda i: (0, 0)),
            pl.BlockSpec(memory_space=pltpu.MemorySpace.SMEM),   # w4: (2,) scalar weights
            pl.BlockSpec(memory_space=pltpu.MemorySpace.SMEM),   # b4: (1,) scalar bias
        ],
        out_specs=pl.BlockSpec((8, tm), lambda i: (0, i)),
        compiler_params=_COMPILER_PARAMS,
    )(w2, x_km, shift, w4_s, b4_s)
    return out[:, :M] if M_pad != M else out


# ----------------------------------------------------------------------------
# Conv wrappers (channels-first, spatial-last activations)
# ----------------------------------------------------------------------------
def conv2d_bn_act(x, w, bias, bn, activation):
    """Conv2d (stride 1, 'same' pad) + BN + act.  x: (Cin, B, H, W), w: (Cout, Cin, k, k)."""
    Cin, B, H, W = x.shape
    Cout, _, k, _ = w.shape
    pad = (k - 1) // 2
    xb = x.astype(jnp.bfloat16)                                     # bf16 BEFORE pad/stack
    xp = jnp.pad(xb, ((0, 0), (0, 0), (pad, pad), (pad, pad)))
    taps = [xp[:, :, di:di + H, dj:dj + W] for di in range(k) for dj in range(k)]
    cols = jnp.stack(taps, axis=1).reshape(Cin * k * k, B * H * W)  # (Cin*k*k, M) bf16
    w2, shift = _fold_bn_into_weight(w.reshape(Cout, Cin * k * k), bias, bn)
    y = gemm_bias_act(w2, cols, shift, activation)                  # (Cout, M) bf16
    return y.reshape(Cout, B, H, W)


def maxpool2x2(x):
    """MaxPool2d(2, 2) on (C, B, H, W) via strided slices (no relayout)."""
    a = x[:, :, 0::2, 0::2]
    b = x[:, :, 0::2, 1::2]
    c = x[:, :, 1::2, 0::2]
    d = x[:, :, 1::2, 1::2]
    return jnp.maximum(jnp.maximum(a, b), jnp.maximum(c, d))


# --- sub-pixel (pixel-shuffle) decomposition of ConvTranspose3d(k=4, s=2, p=1) ----------
# Per axis, output parity p of the transposed conv only touches 2 input taps:
#   even (p=0):  y[2m]   = x[m-1]*w[3] + x[m]*w[1]
#   odd  (p=1):  y[2m+1] = x[m]  *w[2] + x[m+1]*w[0]
# With the input padded by 1, both windows live inside a common 3-tap window, so all
# 8 parity classes fold into ONE stride-1 conv GEMM: N' = 8*Cout, K' = Cin*27, M' = M/8.
def _subpixel_weight(w_t):
    """(Cin, Cout, 4, 4, 4) ConvTranspose3d weight -> (Cout*8, Cin*27) stride-1 weight."""
    Cin, Cout = w_t.shape[0], w_t.shape[1]
    sel = jnp.zeros((2, 3, 4), w_t.dtype)          # sel[parity, tap_offset, kernel_index]
    sel = sel.at[0, 0, 3].set(1.0).at[0, 1, 1].set(1.0)
    sel = sel.at[1, 1, 2].set(1.0).at[1, 2, 0].set(1.0)
    # rows ordered (cout, p_d, p_h, p_w); cols ordered (cin, d_d, d_h, d_w)
    w_sub = jnp.einsum("pxt,qyu,rzv,iotuv->opqrixyz", sel, sel, sel, w_t)
    return w_sub.reshape(Cout * 8, Cin * 27)


def _subpixel_cols(x):
    """x: (Cin, B, D, H, W) -> cols (Cin*27, B*D*H*W) bf16 for the sub-pixel deconv GEMM."""
    Cin, B, D, H, W = x.shape
    xb = x.astype(jnp.bfloat16)                                     # bf16 BEFORE pad/stack
    xp = jnp.pad(xb, ((0, 0), (0, 0), (1, 1), (1, 1), (1, 1)))
    taps = [xp[:, :, dd:dd + D, dh:dh + H, dw:dw + W]
            for dd in range(3) for dh in range(3) for dw in range(3)]
    return jnp.stack(taps, axis=1).reshape(Cin * 27, B * D * H * W)


def _depth_to_space(y, Cout, B, D, H, W):
    """(Cout*8, B*D*H*W) with rows (cout, p_d, p_h, p_w) -> (Cout, B, 2D, 2H, 2W)."""
    y = y.reshape(Cout, 2, 2, 2, B, D, H, W)
    y = y.transpose(0, 4, 5, 1, 6, 2, 7, 3)
    return y.reshape(Cout, B, 2 * D, 2 * H, 2 * W)


def conv_transpose3d_bn_act(x, w_t, bias, bn, activation):
    """ConvTranspose3d(k=4, s=2, p=1) + BN + act via the sub-pixel decomposition."""
    Cin, B, D, H, W = x.shape
    Cout = w_t.shape[1]
    cols = _subpixel_cols(x)                                        # (Cin*27, B*D*H*W)
    w2, shift = _fold_bn_into_weight(_subpixel_weight(w_t), bias, bn, repeat=8)
    y = gemm_bias_act(w2, cols, shift, activation)                  # (Cout*8, M') bf16
    return _depth_to_space(y, Cout, B, D, H, W)


def conv_transpose3d_final(x, w_t, bias, bn, w4, b4):
    """Last deconv (BN+ReLU) with fused 1x1x1 conv + sigmoid.  Returns (B, 2D, 2H, 2W) f32."""
    Cin, B, D, H, W = x.shape
    cols = _subpixel_cols(x)
    w2, shift = _fold_bn_into_weight(_subpixel_weight(w_t), bias, bn, repeat=8)  # (16, K)
    w4_s = w4.reshape(-1).astype(jnp.float32)                       # (2,) SMEM scalars
    b4_s = b4.reshape(-1).astype(jnp.float32)                       # (1,)
    gen = gemm_final_fused(w2, cols, shift, w4_s, b4_s)             # (8, M') f32, rows=parity
    gen = gen.reshape(2, 2, 2, B, D, H, W)
    gen = gen.transpose(3, 4, 0, 5, 1, 6, 2).reshape(B, 2 * D, 2 * H, 2 * W)
    return gen


# ----------------------------------------------------------------------------
# Pix2VoxSharp (small-scale) parameters + forward
# ----------------------------------------------------------------------------
def init_params(seed=0):
    key = jax.random.PRNGKey(seed)
    keys = jax.random.split(key, 16)

    def w_init(k, shape):
        fan_in = 1
        for s in shape[1:]:
            fan_in *= s
        return jax.random.normal(k, shape, jnp.float32) * (fan_in ** -0.5)

    def b_init(k, cout):
        return jax.random.normal(k, (cout,), jnp.float32) * 0.01

    def bn_init(cout):
        return dict(gamma=jnp.ones((cout,), jnp.float32),
                    beta=jnp.zeros((cout,), jnp.float32),
                    mean=jnp.zeros((cout,), jnp.float32),
                    var=jnp.ones((cout,), jnp.float32),
                    eps=jnp.float32(1e-5))

    p = {}
    # Encoder (2D): conv(3->8) / conv(8->16) / conv(16->32), BN+ELU, maxpool(2) after each
    p["e1_w"] = w_init(keys[0], (8, 3, 3, 3));    p["e1_b"] = b_init(keys[1], 8);   p["e1_bn"] = bn_init(8)
    p["e2_w"] = w_init(keys[2], (16, 8, 3, 3));   p["e2_b"] = b_init(keys[3], 16);  p["e2_bn"] = bn_init(16)
    p["e3_w"] = w_init(keys[4], (32, 16, 3, 3));  p["e3_b"] = b_init(keys[5], 32);  p["e3_bn"] = bn_init(32)
    # Decoder (3D): ConvTranspose3d(16->8->4->2, k=4, s=2, p=1) BN+ReLU, then 1x1x1 conv+sigmoid
    p["d1_w"] = w_init(keys[6], (16, 8, 4, 4, 4)); p["d1_b"] = b_init(keys[7], 8);  p["d1_bn"] = bn_init(8)
    p["d2_w"] = w_init(keys[8], (8, 4, 4, 4, 4));  p["d2_b"] = b_init(keys[9], 4);  p["d2_bn"] = bn_init(4)
    p["d3_w"] = w_init(keys[10], (4, 2, 4, 4, 4)); p["d3_b"] = b_init(keys[11], 2); p["d3_bn"] = bn_init(2)
    p["d4_w"] = w_init(keys[12], (1, 2, 1, 1, 1)); p["d4_b"] = b_init(keys[13], 1)
    return p


def encoder(params, x):
    """x: (B, V, C, H, W) -> per-view feature maps in (32, B*V, H/8, W/8) layout."""
    B, V, C, H, W = x.shape
    # single boundary relayout to channels-first / spatial-last; stays there afterwards
    h = x.reshape(B * V, C, H, W).transpose(1, 0, 2, 3)             # (C, B*V, H, W)
    h = conv2d_bn_act(h, params["e1_w"], params["e1_b"], params["e1_bn"], "elu")
    h = maxpool2x2(h)
    h = conv2d_bn_act(h, params["e2_w"], params["e2_b"], params["e2_bn"], "elu")
    h = maxpool2x2(h)
    h = conv2d_bn_act(h, params["e3_w"], params["e3_b"], params["e3_bn"], "elu")
    h = maxpool2x2(h)
    return h                                                        # (32, B*V, 2, 2)


def decoder(params, feats, B, V):
    """feats: (32, B*V, 2, 2) -> gen_volumes (B, V, 16, 16, 16).

    Views folded into the batch; every deconv layer is one sub-pixel Pallas GEMM.
    raw_features are not materialised: they are discarded when USE_MERGER=False."""
    BV = B * V
    f = feats.transpose(1, 0, 2, 3).reshape(BV, 16, 2, 2, 2).transpose(1, 0, 2, 3, 4)
    h = conv_transpose3d_bn_act(f, params["d1_w"], params["d1_b"], params["d1_bn"], "relu")
    h = conv_transpose3d_bn_act(h, params["d2_w"], params["d2_b"], params["d2_bn"], "relu")
    gen = conv_transpose3d_final(h, params["d3_w"], params["d3_b"], params["d3_bn"],
                                 params["d4_w"], params["d4_b"])    # (BV, 16, 16, 16)
    return gen.reshape(B, V, *gen.shape[1:])


def pix2vox_sharp_forward(params, x, use_merger=False):
    """Matches Pix2VoxSharp.forward with self.USE_MERGER = False (set in __init__)."""
    B, V = x.shape[0], x.shape[1]
    feature_maps = encoder(params, x)
    gen = decoder(params, feature_maps, B, V)
    if use_merger:
        # TODO(synk): Merger/Refiner source not provided and USE_MERGER=False in __init__,
        # so this branch is not on the reference forward path.
        raise NotImplementedError("Merger/Refiner path is disabled (set_merger(False)).")
    # torch.squeeze(gen, dim=1): only squeezes if the view axis has size 1.
    return jnp.squeeze(gen, axis=1) if V == 1 else gen


if __name__ == "__main__":
    params = init_params(seed=0)
    key = jax.random.PRNGKey(0)
    # x: (batch=2, n_views=1, channels=3, H=16, W=16)
    x = jax.random.normal(key, (2, 1, 3, 16, 16), jnp.float32)

    fwd = jax.jit(pix2vox_sharp_forward)
    volume = jax.block_until_ready(fwd(params, x))

    assert volume.shape == (2, 16, 16, 16), volume.shape
    assert bool(jnp.all(jnp.isfinite(volume)))
    # sigmoid output; EUP approx-reciprocal epilogue may overshoot 1.0 by <= ~1e-4
    assert bool(jnp.all((volume >= 0.0) & (volume <= 1.0 + 1e-3)))
    print("KERNEL_OK")
</pallas_src>

<mosaic_0001>
module attributes {stable_mosaic.version = 11 : i64} {
  func.func @_gemm_bias_act_kernel(%arg0: i32, %arg1: memref<8x27xbf16, #tpu.memory_space<vmem>>, %arg2: memref<27x256xbf16, #tpu.memory_space<vmem>>, %arg3: memref<8x1xf32, #tpu.memory_space<vmem>>, %arg4: memref<8x256xbf16, #tpu.memory_space<vmem>>) attributes {dimension_semantics = [#tpu.dimension_semantics<parallel>], iteration_bounds = array<i64: 2>, scalar_prefetch = 0 : i64, scratch_operands = 0 : i64, tpu.core_type = #tpu.core_type<tc>, window_params = [{pipeline_mode = #tpu.pipeline_mode<synchronous>, transform_indices = @transform_0, window_bounds = array<i64: 8, 27>}, {transform_indices = @transform_1, window_bounds = array<i64: 27, 256>}, {pipeline_mode = #tpu.pipeline_mode<synchronous>, transform_indices = @transform_2, window_bounds = array<i64: 8, 1>}, {transform_indices = @transform_3, window_bounds = array<i64: 8, 256>}]} {
    %c0 = arith.constant 0 : index
    %c0_0 = arith.constant 0 : index
    %0 = vector.load %arg1[%c0, %c0_0] : memref<8x27xbf16, #tpu.memory_space<vmem>>, vector<8x27xbf16>
    %c0_1 = arith.constant 0 : index
    %c0_2 = arith.constant 0 : index
    %1 = vector.load %arg2[%c0_1, %c0_2] : memref<27x256xbf16, #tpu.memory_space<vmem>>, vector<27x256xbf16>
    %cst = arith.constant dense<0.000000e+00> : vector<8x256xf32>
    %2 = tpu.matmul %0, %1, %cst {dimension_numbers = #tpu.dot_dimension_numbers<[1], [0], [0], [1], [0, 0, 1, 1], [], []>} : vector<8x27xbf16>, vector<27x256xbf16>, vector<8x256xf32> -> vector<8x256xf32>
    %c0_3 = arith.constant 0 : index
    %c0_4 = arith.constant 0 : index
    %3 = vector.load %arg3[%c0_3, %c0_4] : memref<8x1xf32, #tpu.memory_space<vmem>>, vector<8x1xf32>
    %4 = vector.broadcast %3 : vector<8x1xf32> to vector<8x256xf32>
    %5 = arith.addf %2, %4 : vector<8x256xf32>
    %cst_5 = arith.constant 0.000000e+00 : f32
    %6 = vector.broadcast %cst_5 : f32 to vector<8x256xf32>
    %7 = arith.cmpf ogt, %5, %6 : vector<8x256xf32>
    %cst_6 = arith.constant 0.000000e+00 : f32
    %8 = vector.broadcast %cst_6 : f32 to vector<8x256xf32>
    %9 = arith.minimumf %5, %8 : vector<8x256xf32>
    %10 = math.exp %9 : vector<8x256xf32>
    %cst_7 = arith.constant 1.000000e+00 : f32
    %11 = vector.broadcast %cst_7 : f32 to vector<8x256xf32>
    %12 = arith.subf %10, %11 : vector<8x256xf32>
    %13 = arith.select %7, %5, %12 : vector<8x256xi1>, vector<8x256xf32>
    %14 = arith.truncf %13 : vector<8x256xf32> to vector<8x256xbf16>
    %c0_8 = arith.constant 0 : index
    %c0_9 = arith.constant 0 : index
    %15 = vector.load %arg4[%c0_8, %c0_9] : memref<8x256xbf16, #tpu.memory_space<vmem>>, vector<8x256xbf16>
    tpu.vector_store %arg4[%c0_8, %c0_9], %14 {strides = array<i32>} : memref<8x256xbf16, #tpu.memory_space<vmem>>, vector<8x256xbf16>,
    return
  }
  func.func @transform_0(%arg0: i32) -> (i32, i32) {
    %c0_i32 = arith.constant 0 : i32
    %c0_i32_0 = arith.constant 0 : i32
    %c0_i32_1 = arith.constant 0 : i32
    return %c0_i32, %c0_i32_0 : i32, i32
  }
  func.func @transform_1(%arg0: i32) -> (i32, i32) {
    %c0_i32 = arith.constant 0 : i32
    %c0_i32_0 = arith.constant 0 : i32
    return %c0_i32, %arg0 : i32, i32
  }
  func.func @transform_2(%arg0: i32) -> (i32, i32) {
    %c0_i32 = arith.constant 0 : i32
    %c0_i32_0 = arith.constant 0 : i32
    %c0_i32_1 = arith.constant 0 : i32
    return %c0_i32, %c0_i32_0 : i32, i32
  }
  func.func @transform_3(%arg0: i32) -> (i32, i32) {
    %c0_i32 = arith.constant 0 : i32
    %c0_i32_0 = arith.constant 0 : i32
    return %c0_i32, %arg0 : i32, i32
  }
}

module attributes {stable_mosaic.version = 11 : i64} {
  func.func @_gemm_bias_act_kernel(%arg0: i32, %arg1: memref<16x72xbf16, #tpu.memory_space<vmem>>, %arg2: memref<72x128xbf16, #tpu.memory_space<vmem>>, %arg3: memref<16x1xf32, #tpu.memory_space<vmem>>, %arg4: memref<16x128xbf16, #tpu.memory_space<vmem>>) attributes {dimension_semantics = [#tpu.dimension_semantics<parallel>], iteration_bounds = array<i64: 1>, scalar_prefetch = 0 : i64, scratch_operands = 0 : i64, tpu.core_type = #tpu.core_type<tc>, window_params = [{pipeline_mode = #tpu.pipeline_mode<synchronous>, transform_indices = @transform_0, window_bounds = array<i64: 16, 72>}, {transform_indices = @transform_1, window_bounds = array<i64: 72, 128>}, {pipeline_mode = #tpu.pipeline_mode<synchronous>, transform_indices = @transform_2, window_bounds = array<i64: 16, 1>}, {transform_indices = @transform_3, window_bounds = array<i64: 16, 128>}]} {
    %c0 = arith.constant 0 : index
    %c0_0 = arith.constant 0 : index
    %0 = vector.load %arg1[%c0, %c0_0] : memref<16x72xbf16, #tpu.memory_space<vmem>>, vector<16x72xbf16>
    %c0_1 = arith.constant 0 : index
    %c0_2 = arith.constant 0 : index
    %1 = vector.load %arg2[%c0_1, %c0_2] : memref<72x128xbf16, #tpu.memory_space<vmem>>, vector<72x128xbf16>
    %cst = arith.constant dense<0.000000e+00> : vector<16x128xf32>
    %2 = tpu.matmul %0, %1, %cst {dimension_numbers = #tpu.dot_dimension_numbers<[1], [0], [0], [1], [0, 0, 1, 1], [], []>} : vector<16x72xbf16>, vector<72x128xbf16>, vector<16x128xf32> -> vector<16x128xf32>
    %c0_3 = arith.constant 0 : index
    %c0_4 = arith.constant 0 : index
    %3 = vector.load %arg3[%c0_3, %c0_4] : memref<16x1xf32, #tpu.memory_space<vmem>>, vector<16x1xf32>
    %4 = vector.broadcast %3 : vector<16x1xf32> to vector<16x128xf32>
    %5 = arith.addf %2, %4 : vector<16x128xf32>
    %cst_5 = arith.constant 0.000000e+00 : f32
    %6 = vector.broadcast %cst_5 : f32 to vector<16x128xf32>
    %7 = arith.cmpf ogt, %5, %6 : vector<16x128xf32>
    %cst_6 = arith.constant 0.000000e+00 : f32
    %8 = vector.broadcast %cst_6 : f32 to vector<16x128xf32>
    %9 = arith.minimumf %5, %8 : vector<16x128xf32>
    %10 = math.exp %9 : vector<16x128xf32>
    %cst_7 = arith.constant 1.000000e+00 : f32
    %11 = vector.broadcast %cst_7 : f32 to vector<16x128xf32>
    %12 = arith.subf %10, %11 : vector<16x128xf32>
    %13 = arith.select %7, %5, %12 : vector<16x128xi1>, vector<16x128xf32>
    %14 = arith.truncf %13 : vector<16x128xf32> to vector<16x128xbf16>
    %c0_8 = arith.constant 0 : index
    %c0_9 = arith.constant 0 : index
    %15 = vector.load %arg4[%c0_8, %c0_9] : memref<16x128xbf16, #tpu.memory_space<vmem>>, vector<16x128xbf16>
    tpu.vector_store %arg4[%c0_8, %c0_9], %14 {strides = array<i32>} : memref<16x128xbf16, #tpu.memory_space<vmem>>, vector<16x128xbf16>,
    return
  }
  func.func @transform_0(%arg0: i32) -> (i32, i32) {
    %c0_i32 = arith.constant 0 : i32
    %c0_i32_0 = arith.constant 0 : i32
    %c0_i32_1 = arith.constant 0 : i32
    return %c0_i32, %c0_i32_0 : i32, i32
  }
  func.func @transform_1(%arg0: i32) -> (i32, i32) {
    %c0_i32 = arith.constant 0 : i32
    %c0_i32_0 = arith.constant 0 : i32
    return %c0_i32, %arg0 : i32, i32
  }
  func.func @transform_2(%arg0: i32) -> (i32, i32) {
    %c0_i32 = arith.constant 0 : i32
    %c0_i32_0 = arith.constant 0 : i32
    %c0_i32_1 = arith.constant 0 : i32
    return %c0_i32, %c0_i32_0 : i32, i32
  }
  func.func @transform_3(%arg0: i32) -> (i32, i32) {
    %c0_i32 = arith.constant 0 : i32
    %c0_i32_0 = arith.constant 0 : i32
    return %c0_i32, %arg0 : i32, i32
  }
}

module attributes {stable_mosaic.version = 11 : i64} {
  func.func @_gemm_bias_act_kernel(%arg0: i32, %arg1: memref<32x144xbf16, #tpu.memory_space<vmem>>, %arg2: memref<144x128xbf16, #tpu.memory_space<vmem>>, %arg3: memref<32x1xf32, #tpu.memory_space<vmem>>, %arg4: memref<32x128xbf16, #tpu.memory_space<vmem>>) attributes {dimension_semantics = [#tpu.dimension_semantics<parallel>], iteration_bounds = array<i64: 1>, scalar_prefetch = 0 : i64, scratch_operands = 0 : i64, tpu.core_type = #tpu.core_type<tc>, window_params = [{pipeline_mode = #tpu.pipeline_mode<synchronous>, transform_indices = @transform_0, window_bounds = array<i64: 32, 144>}, {transform_indices = @transform_1, window_bounds = array<i64: 144, 128>}, {pipeline_mode = #tpu.pipeline_mode<synchronous>, transform_indices = @transform_2, window_bounds = array<i64: 32, 1>}, {transform_indices = @transform_3, window_bounds = array<i64: 32, 128>}]} {
    %c0 = arith.constant 0 : index
    %c0_0 = arith.constant 0 : index
    %0 = vector.load %arg1[%c0, %c0_0] : memref<32x144xbf16, #tpu.memory_space<vmem>>, vector<32x144xbf16>
    %c0_1 = arith.constant 0 : index
    %c0_2 = arith.constant 0 : index
    %1 = vector.load %arg2[%c0_1, %c0_2] : memref<144x128xbf16, #tpu.memory_space<vmem>>, vector<144x128xbf16>
    %cst = arith.constant dense<0.000000e+00> : vector<32x128xf32>
    %2 = tpu.matmul %0, %1, %cst {dimension_numbers = #tpu.dot_dimension_numbers<[1], [0], [0], [1], [0, 0, 1, 1], [], []>} : vector<32x144xbf16>, vector<144x128xbf16>, vector<32x128xf32> -> vector<32x128xf32>
    %c0_3 = arith.constant 0 : index
    %c0_4 = arith.constant 0 : index
    %3 = vector.load %arg3[%c0_3, %c0_4] : memref<32x1xf32, #tpu.memory_space<vmem>>, vector<32x1xf32>
    %4 = vector.broadcast %3 : vector<32x1xf32> to vector<32x128xf32>
    %5 = arith.addf %2, %4 : vector<32x128xf32>
    %cst_5 = arith.constant 0.000000e+00 : f32
    %6 = vector.broadcast %cst_5 : f32 to vector<32x128xf32>
    %7 = arith.cmpf ogt, %5, %6 : vector<32x128xf32>
    %cst_6 = arith.constant 0.000000e+00 : f32
    %8 = vector.broadcast %cst_6 : f32 to vector<32x128xf32>
    %9 = arith.minimumf %5, %8 : vector<32x128xf32>
    %10 = math.exp %9 : vector<32x128xf32>
    %cst_7 = arith.constant 1.000000e+00 : f32
    %11 = vector.broadcast %cst_7 : f32 to vector<32x128xf32>
    %12 = arith.subf %10, %11 : vector<32x128xf32>
    %13 = arith.select %7, %5, %12 : vector<32x128xi1>, vector<32x128xf32>
    %14 = arith.truncf %13 : vector<32x128xf32> to vector<32x128xbf16>
    %c0_8 = arith.constant 0 : index
    %c0_9 = arith.constant 0 : index
    %15 = vector.load %arg4[%c0_8, %c0_9] : memref<32x128xbf16, #tpu.memory_space<vmem>>, vector<32x128xbf16>
    tpu.vector_store %arg4[%c0_8, %c0_9], %14 {strides = array<i32>} : memref<32x128xbf16, #tpu.memory_space<vmem>>, vector<32x128xbf16>,
    return
  }
  func.func @transform_0(%arg0: i32) -> (i32, i32) {
    %c0_i32 = arith.constant 0 : i32
    %c0_i32_0 = arith.constant 0 : i32
    %c0_i32_1 = arith.constant 0 : i32
    return %c0_i32, %c0_i32_0 : i32, i32
  }
  func.func @transform_1(%arg0: i32) -> (i32, i32) {
    %c0_i32 = arith.constant 0 : i32
    %c0_i32_0 = arith.constant 0 : i32
    return %c0_i32, %arg0 : i32, i32
  }
  func.func @transform_2(%arg0: i32) -> (i32, i32) {
    %c0_i32 = arith.constant 0 : i32
    %c0_i32_0 = arith.constant 0 : i32
    %c0_i32_1 = arith.constant 0 : i32
    return %c0_i32, %c0_i32_0 : i32, i32
  }
  func.func @transform_3(%arg0: i32) -> (i32, i32) {
    %c0_i32 = arith.constant 0 : i32
    %c0_i32_0 = arith.constant 0 : i32
    return %c0_i32, %arg0 : i32, i32
  }
}

module attributes {stable_mosaic.version = 11 : i64} {
  func.func @_gemm_bias_act_kernel(%arg0: i32, %arg1: memref<64x432xbf16, #tpu.memory_space<vmem>>, %arg2: memref<432x128xbf16, #tpu.memory_space<vmem>>, %arg3: memref<64x1xf32, #tpu.memory_space<vmem>>, %arg4: memref<64x128xbf16, #tpu.memory_space<vmem>>) attributes {dimension_semantics = [#tpu.dimension_semantics<parallel>], iteration_bounds = array<i64: 1>, scalar_prefetch = 0 : i64, scratch_operands = 0 : i64, tpu.core_type = #tpu.core_type<tc>, window_params = [{pipeline_mode = #tpu.pipeline_mode<synchronous>, transform_indices = @transform_0, window_bounds = array<i64: 64, 432>}, {transform_indices = @transform_1, window_bounds = array<i64: 432, 128>}, {pipeline_mode = #tpu.pipeline_mode<synchronous>, transform_indices = @transform_2, window_bounds = array<i64: 64, 1>}, {transform_indices = @transform_3, window_bounds = array<i64: 64, 128>}]} {
    %c0 = arith.constant 0 : index
    %c0_0 = arith.constant 0 : index
    %0 = vector.load %arg1[%c0, %c0_0] : memref<64x432xbf16, #tpu.memory_space<vmem>>, vector<64x432xbf16>
    %c0_1 = arith.constant 0 : index
    %c0_2 = arith.constant 0 : index
    %1 = vector.load %arg2[%c0_1, %c0_2] : memref<432x128xbf16, #tpu.memory_space<vmem>>, vector<432x128xbf16>
    %cst = arith.constant dense<0.000000e+00> : vector<64x128xf32>
    %2 = tpu.matmul %0, %1, %cst {dimension_numbers = #tpu.dot_dimension_numbers<[1], [0], [0], [1], [0, 0, 1, 1], [], []>} : vector<64x432xbf16>, vector<432x128xbf16>, vector<64x128xf32> -> vector<64x128xf32>
    %c0_3 = arith.constant 0 : index
    %c0_4 = arith.constant 0 : index
    %3 = vector.load %arg3[%c0_3, %c0_4] : memref<64x1xf32, #tpu.memory_space<vmem>>, vector<64x1xf32>
    %4 = vector.broadcast %3 : vector<64x1xf32> to vector<64x128xf32>
    %5 = arith.addf %2, %4 : vector<64x128xf32>
    %cst_5 = arith.constant 0.000000e+00 : f32
    %6 = vector.broadcast %cst_5 : f32 to vector<64x128xf32>
    %7 = arith.maximumf %5, %6 : vector<64x128xf32>
    %8 = arith.truncf %7 : vector<64x128xf32> to vector<64x128xbf16>
    %c0_6 = arith.constant 0 : index
    %c0_7 = arith.constant 0 : index
    %9 = vector.load %arg4[%c0_6, %c0_7] : memref<64x128xbf16, #tpu.memory_space<vmem>>, vector<64x128xbf16>
    tpu.vector_store %arg4[%c0_6, %c0_7], %8 {strides = array<i32>} : memref<64x128xbf16, #tpu.memory_space<vmem>>, vector<64x128xbf16>,
    return
  }
  func.func @transform_0(%arg0: i32) -> (i32, i32) {
    %c0_i32 = arith.constant 0 : i32
    %c0_i32_0 = arith.constant 0 : i32
    %c0_i32_1 = arith.constant 0 : i32
    return %c0_i32, %c0_i32_0 : i32, i32
  }
  func.func @transform_1(%arg0: i32) -> (i32, i32) {
    %c0_i32 = arith.constant 0 : i32
    %c0_i32_0 = arith.constant 0 : i32
    return %c0_i32, %arg0 : i32, i32
  }
  func.func @transform_2(%arg0: i32) -> (i32, i32) {
    %c0_i32 = arith.constant 0 : i32
    %c0_i32_0 = arith.constant 0 : i32
    %c0_i32_1 = arith.constant 0 : i32
    return %c0_i32, %c0_i32_0 : i32, i32
  }
  func.func @transform_3(%arg0: i32) -> (i32, i32) {
    %c0_i32 = arith.constant 0 : i32
    %c0_i32_0 = arith.constant 0 : i32
    return %c0_i32, %arg0 : i32, i32
  }
}

module attributes {stable_mosaic.version = 11 : i64} {
  func.func @_gemm_bias_act_kernel(%arg0: i32, %arg1: memref<32x216xbf16, #tpu.memory_space<vmem>>, %arg2: memref<216x128xbf16, #tpu.memory_space<vmem>>, %arg3: memref<32x1xf32, #tpu.memory_space<vmem>>, %arg4: memref<32x128xbf16, #tpu.memory_space<vmem>>) attributes {dimension_semantics = [#tpu.dimension_semantics<parallel>], iteration_bounds = array<i64: 1>, scalar_prefetch = 0 : i64, scratch_operands = 0 : i64, tpu.core_type = #tpu.core_type<tc>, window_params = [{pipeline_mode = #tpu.pipeline_mode<synchronous>, transform_indices = @transform_0, window_bounds = array<i64: 32, 216>}, {transform_indices = @transform_1, window_bounds = array<i64: 216, 128>}, {pipeline_mode = #tpu.pipeline_mode<synchronous>, transform_indices = @transform_2, window_bounds = array<i64: 32, 1>}, {transform_indices = @transform_3, window_bounds = array<i64: 32, 128>}]} {
    %c0 = arith.constant 0 : index
    %c0_0 = arith.constant 0 : index
    %0 = vector.load %arg1[%c0, %c0_0] : memref<32x216xbf16, #tpu.memory_space<vmem>>, vector<32x216xbf16>
    %c0_1 = arith.constant 0 : index
    %c0_2 = arith.constant 0 : index
    %1 = vector.load %arg2[%c0_1, %c0_2] : memref<216x128xbf16, #tpu.memory_space<vmem>>, vector<216x128xbf16>
    %cst = arith.constant dense<0.000000e+00> : vector<32x128xf32>
    %2 = tpu.matmul %0, %1, %cst {dimension_numbers = #tpu.dot_dimension_numbers<[1], [0], [0], [1], [0, 0, 1, 1], [], []>} : vector<32x216xbf16>, vector<216x128xbf16>, vector<32x128xf32> -> vector<32x128xf32>
    %c0_3 = arith.constant 0 : index
    %c0_4 = arith.constant 0 : index
    %3 = vector.load %arg3[%c0_3, %c0_4] : memref<32x1xf32, #tpu.memory_space<vmem>>, vector<32x1xf32>
    %4 = vector.broadcast %3 : vector<32x1xf32> to vector<32x128xf32>
    %5 = arith.addf %2, %4 : vector<32x128xf32>
    %cst_5 = arith.constant 0.000000e+00 : f32
    %6 = vector.broadcast %cst_5 : f32 to vector<32x128xf32>
    %7 = arith.maximumf %5, %6 : vector<32x128xf32>
    %8 = arith.truncf %7 : vector<32x128xf32> to vector<32x128xbf16>
    %c0_6 = arith.constant 0 : index
    %c0_7 = arith.constant 0 : index
    %9 = vector.load %arg4[%c0_6, %c0_7] : memref<32x128xbf16, #tpu.memory_space<vmem>>, vector<32x128xbf16>
    tpu.vector_store %arg4[%c0_6, %c0_7], %8 {strides = array<i32>} : memref<32x128xbf16, #tpu.memory_space<vmem>>, vector<32x128xbf16>,
    return
  }
  func.func @transform_0(%arg0: i32) -> (i32, i32) {
    %c0_i32 = arith.constant 0 : i32
    %c0_i32_0 = arith.constant 0 : i32
    %c0_i32_1 = arith.constant 0 : i32
    return %c0_i32, %c0_i32_0 : i32, i32
  }
  func.func @transform_1(%arg0: i32) -> (i32, i32) {
    %c0_i32 = arith.constant 0 : i32
    %c0_i32_0 = arith.constant 0 : i32
    return %c0_i32, %arg0 : i32, i32
  }
  func.func @transform_2(%arg0: i32) -> (i32, i32) {
    %c0_i32 = arith.constant 0 : i32
    %c0_i32_0 = arith.constant 0 : i32
    %c0_i32_1 = arith.constant 0 : i32
    return %c0_i32, %c0_i32_0 : i32, i32
  }
  func.func @transform_3(%arg0: i32) -> (i32, i32) {
    %c0_i32 = arith.constant 0 : i32
    %c0_i32_0 = arith.constant 0 : i32
    return %c0_i32, %arg0 : i32, i32
  }
}

module attributes {stable_mosaic.version = 11 : i64} {
  func.func @_deconv_final_kernel(%arg0: i32, %arg1: memref<16x108xbf16, #tpu.memory_space<vmem>>, %arg2: memref<108x512xbf16, #tpu.memory_space<vmem>>, %arg3: memref<16x1xf32, #tpu.memory_space<vmem>>, %arg4: memref<2xf32, #tpu.memory_space<smem>>, %arg5: memref<1xf32, #tpu.memory_space<smem>>, %arg6: memref<8x512xf32, #tpu.memory_space<vmem>>) attributes {dimension_semantics = [#tpu.dimension_semantics<parallel>], iteration_bounds = array<i64: 2>, scalar_prefetch = 0 : i64, scratch_operands = 0 : i64, tpu.core_type = #tpu.core_type<tc>, window_params = [{pipeline_mode = #tpu.pipeline_mode<synchronous>, transform_indices = @transform_0, window_bounds = array<i64: 16, 108>}, {transform_indices = @transform_1, window_bounds = array<i64: 108, 512>}, {pipeline_mode = #tpu.pipeline_mode<synchronous>, transform_indices = @transform_2, window_bounds = array<i64: 16, 1>}, {transform_indices = @transform_3, window_bounds = array<i64: 2>}, {transform_indices = @transform_4, window_bounds = array<i64: 1>}, {transform_indices = @transform_5, window_bounds = array<i64: 8, 512>}]} {
    %c0 = arith.constant 0 : index
    %c0_0 = arith.constant 0 : index
    %0 = vector.load %arg1[%c0, %c0_0] : memref<16x108xbf16, #tpu.memory_space<vmem>>, vector<16x108xbf16>
    %c0_1 = arith.constant 0 : index
    %c0_2 = arith.constant 0 : index
    %1 = vector.load %arg2[%c0_1, %c0_2] : memref<108x512xbf16, #tpu.memory_space<vmem>>, vector<108x512xbf16>
    %cst = arith.constant dense<0.000000e+00> : vector<16x512xf32>
    %2 = tpu.matmul %0, %1, %cst {dimension_numbers = #tpu.dot_dimension_numbers<[1], [0], [0], [1], [0, 0, 1, 1], [], []>} : vector<16x108xbf16>, vector<108x512xbf16>, vector<16x512xf32> -> vector<16x512xf32>
    %c0_3 = arith.constant 0 : index
    %c0_4 = arith.constant 0 : index
    %3 = vector.load %arg3[%c0_3, %c0_4] : memref<16x1xf32, #tpu.memory_space<vmem>>, vector<16x1xf32>
    %4 = vector.broadcast %3 : vector<16x1xf32> to vector<16x512xf32>
    %5 = arith.addf %2, %4 : vector<16x512xf32>
    %cst_5 = arith.constant 0.000000e+00 : f32
    %6 = vector.broadcast %cst_5 : f32 to vector<16x512xf32>
    %7 = arith.maximumf %5, %6 : vector<16x512xf32>
    %8 = vector.extract_strided_slice %7 {offsets = [0, 0], sizes = [8, 512], strides = [1, 1]} : vector<16x512xf32> to vector<8x512xf32>
    %c0_6 = arith.constant 0 : index
    %9 = memref.load %arg4[%c0_6] : memref<2xf32, #tpu.memory_space<smem>>
    %10 = vector.broadcast %9 : f32 to vector<8x512xf32>
    %11 = arith.mulf %8, %10 : vector<8x512xf32>
    %12 = vector.extract_strided_slice %7 {offsets = [8, 0], sizes = [8, 512], strides = [1, 1]} : vector<16x512xf32> to vector<8x512xf32>
    %c1 = arith.constant 1 : index
    %13 = memref.load %arg4[%c1] : memref<2xf32, #tpu.memory_space<smem>>
    %14 = vector.broadcast %13 : f32 to vector<8x512xf32>
    %15 = arith.mulf %12, %14 : vector<8x512xf32>
    %16 = arith.addf %11, %15 : vector<8x512xf32>
    %c0_7 = arith.constant 0 : index
    %17 = memref.load %arg5[%c0_7] : memref<1xf32, #tpu.memory_space<smem>>
    %18 = vector.broadcast %17 : f32 to vector<8x512xf32>
    %19 = arith.addf %16, %18 : vector<8x512xf32>
    %cst_8 = arith.constant 0.000000e+00 : f32
    %20 = vector.broadcast %cst_8 : f32 to vector<8x512xf32>
    %21 = arith.subf %20, %19 : vector<8x512xf32>
    %22 = math.exp %21 : vector<8x512xf32>
    %cst_9 = arith.constant 1.000000e+00 : f32
    %23 = vector.broadcast %cst_9 : f32 to vector<8x512xf32>
    %24 = arith.addf %23, %22 : vector<8x512xf32>
    %25 = tpu.reciprocal %24 {approx = true} : vector<8x512xf32> -> vector<8x512xf32>
    %c0_10 = arith.constant 0 : index
    %c0_11 = arith.constant 0 : index
    %26 = vector.load %arg6[%c0_10, %c0_11] : memref<8x512xf32, #tpu.memory_space<vmem>>, vector<8x512xf32>
    tpu.vector_store %arg6[%c0_10, %c0_11], %25 {strides = array<i32>} : memref<8x512xf32, #tpu.memory_space<vmem>>, vector<8x512xf32>,
    return
  }
  func.func @transform_0(%arg0: i32) -> (i32, i32) {
    %c0_i32 = arith.constant 0 : i32
    %c0_i32_0 = arith.constant 0 : i32
    %c0_i32_1 = arith.constant 0 : i32
    return %c0_i32, %c0_i32_0 : i32, i32
  }
  func.func @transform_1(%arg0: i32) -> (i32, i32) {
    %c0_i32 = arith.constant 0 : i32
    %c0_i32_0 = arith.constant 0 : i32
    return %c0_i32, %arg0 : i32, i32
  }
  func.func @transform_2(%arg0: i32) -> (i32, i32) {
    %c0_i32 = arith.constant 0 : i32
    %c0_i32_0 = arith.constant 0 : i32
    %c0_i32_1 = arith.constant 0 : i32
    return %c0_i32, %c0_i32_0 : i32, i32
  }
  func.func @transform_3(%arg0: i32) -> i32 {
    %c0_i32 = arith.constant 0 : i32
    %c0_i32_0 = arith.constant 0 : i32
    return %c0_i32 : i32
  }
  func.func @transform_4(%arg0: i32) -> i32 {
    %c0_i32 = arith.constant 0 : i32
    %c0_i32_0 = arith.constant 0 : i32
    return %c0_i32 : i32
  }
  func.func @transform_5(%arg0: i32) -> (i32, i32) {
    %c0_i32 = arith.constant 0 : i32
    %c0_i32_0 = arith.constant 0 : i32
    return %c0_i32, %arg0 : i32, i32
  }
}

</mosaic_0001>

<bundles_post_ra>
// kernel: pix2vox_sharp_forward.6
= control target key start
LH: loop header
LB: loop body
LE: loop exit
PB: predicated region body
PF: predicated region fallthrough
CT: control target
= control target key end

     0   :  { %s482_s12 = smov 0   ;;  %s484_s13 = smov 0   ;;  %s540_s0 = inlined_call_operand.vmem [shape: bf16[8,27], index: 0, kind: input, shape index: {}]   ;;  %s541_s1 = inlined_call_operand.vmem [shape: bf16[27,512], index: 1, kind: input, shape index: {}]   ;;  %s542_s2 = inlined_call_operand.vmem [shape: f32[8,1], index: 2, kind: input, shape index: {}]   ;;  %s543_s3 = inlined_call_operand.vmem [shape: bf16[8,512], index: 3, kind: output, shape index: {}]  }
   0x1   :  { %s486_s14 = smov 0  }
   0x2 LB: > { %s367_s15 = sadd.s32 4294967295, %s458_s14   ;;  %s499_s16 = sadd.s32 1, %s458_s14   ;;  %s458_s14 = sphi %s486_s14, %s546_s14   ;;  %s454_s13 = sphi %s484_s13, %s545_s13   ;;  %s450_s12 = sphi %s482_s12, %s544_s12  }
   0x3   : > { %s38_s17 = ssub.s32 %s458_s14, %s499_s16  ;;  %s41_s18 = sadd.s32 1, %s454_s13 }
   0x4   : > { %p39_p0 = scmp.eq.s32.totalorder %s38_s17, 0  ;;  %p48_p1 = scmp.ne.s32.totalorder %s454_s13, %s450_s12 }
   0x5   : > { %p49_p2 = scmp.eq.s32.totalorder %s458_s14, 0  ;;  %p370_p4 = scmp.ge.s32.totalorder %s458_s14, 2 }
   0x6   : > { %s508_s19 = scalar_select %p39_p0, %s454_s13, %s41_s18  }
   0x7   : > { %p50_p3 = por %p49_p2, %p48_p1  ;;  %127 = sbr.rel (%p370_p4) target bundleno = 20 (0x14), region = 24 }
   0xc   : > { %130 = sbr.rel (!%p50_p3) target bundleno = 20 (0x14), region = 28  ;;  %s132_s20 = sand.u32 (%p50_p3), 1, %s454_s13  }
   0xd   : > { %s400_s21 = sshll.u32 (%p50_p3), %s458_s14, 3  ;;  %s371_s22 = sshll.u32 (%p50_p3), %s132_s20, 5 }
   0xe   : > { %s137_s25 = scalar_lea.vmem (%p50_p3), %s541_s1, %s400_s21  ;;  %s134_s26 = scalar_lea.vmem (%p50_p3), [#allocation2], %s371_s22 }
   0xf   : > { %v172_v0 = vld [vmem:[%s137_s25] sm:$0xff] (%p50_p3)  ;;  %v174_v1 = vld [vmem:[%s137_s25 + $0x10] sm:$0xff] (%p50_p3) }
  0x10   : > { %v176_v2 = vld [vmem:[%s137_s25 + $0x20] sm:$0xff] (%p50_p3)  ;;  %173 = vst [vmem:[%s134_s26] sm:$0xff] (%p50_p3), %v172_v0  ;;  %v178_v3 = vld [vmem:[%s137_s25 + $0x30] sm:$0xff] (%p50_p3) }
  0x11   : > { %175 = vst [vmem:[%s134_s26 + $0x8] sm:$0xff] %v174_v1 }
  0x12   : > { %177 = vst [vmem:[%s134_s26 + $0x10] sm:$0xff] %v176_v2 }
  0x13   : > { %179 = vst [vmem:[%s134_s26 + $0x18] sm:$0xff] %v178_v3 }
  0x14 PF: > { %p374_p5 = scmp.ge.s32.totalorder %s458_s14, 1  ;;  %p184_p6 = scmp.lt.s32.totalorder %s458_s14, 3 }
  0x16   : > { %p185_p7 = pnand %p374_p5, %p184_p6 }
  0x17   : > { %s191_s27 = sand.u32 (!%p185_p7), 1, %s450_s12   ;;  %s376_s7 = sshll.u32 (!%p185_p7), %s367_s15, 1 }
  0x18   : > { %188 = sbr.rel (%p185_p7) target bundleno = 188 (0xbc), region = 66  ;;  %s375_s28 = sshll.u32 (!%p185_p7), %s191_s27, 5 }
  0x19   : > { %s193_s4 = scalar_lea.vmem (!%p185_p7), [#allocation2], %s375_s28  ;;  %p216_p8 = scmp.lt.s32.totalorder (!%p185_p7), %s376_s7, 3 }
  0x1d   : > { %vm255_vm0 = vcmask 1044480   ;;  %vm256_vm1 = vcmask 1045504   ;;  %v460_v4 = vmov 65535   ;;  %v227_v6 = vld [vmem:[%s542_s2] sm:$0xff]  ;;  %v461_v8 = vmov 0   ;;  %s548_s7 = smov (!%p216_p8, %s376_s7), 3 }
  0x1e   : > { %v257_v5 = vsel %vm255_vm0, 4294967295, %v460_v4  ;;  %431 = vset.pattern.permute.xlu0 %v461_v8  ;;  %v388_v9 = vld [vmem:[%s193_s4 + $0x10] sm:$0xf]  ;;  %v404_v10 = vld [vmem:[%s193_s4 + $0x14] sm:$0x30]  ;;  %vm251_vm2 = vcmask 220160  }
  0x1f   : > { %v258_v7 = vsel %vm256_vm1, %v257_v5, 0  ;;  %v403_v11 = vld [vmem:[%s193_s4 + $0x14] sm:$0xf]  ;;  %230 = vperm.xlu0 %431, %v227_v6   ;;  %v389_v12 = vor.u32 %v404_v10, %v388_v9  ;;  %v390_v13 = vld [vmem:[%s193_s4 + $0x18] sm:$0x30]  ;;  %s377_s8 = sshll.u32 %s548_s7, 2 }
  0x20   : > { %v393_v14 = vor.u32 %v403_v11, %v390_v13  ;;  %v380_v15 = vld [vmem:[%s193_s4] sm:$0xf]  ;;  %v402_v16 = vld [vmem:[%s193_s4 + $0x4] sm:$0xf0]  ;;  %v401_v18 = vld [vmem:[%s193_s4 + $0x4] sm:$0xf]  ;;  %s219_s11 = scalar_lea.vmem %s543_s3, %s377_s8 }
  0x21   : > { %v260_v17 = vand.u32 %v389_v12, %v258_v7  ;;  %v382_v19 = vld [vmem:[%s193_s4 + $0x8] sm:$0xf0]  ;;  %v381_v21 = vor.u32 %v402_v16, %v380_v15  ;;  %v222_v23 = vld [vmem:[%s540_s0] sm:$0xf] }
  0x22   : > { %v263_v20 = vand.u32 %v393_v14, %v258_v7  ;;  %v385_v22 = vor.u32 %v401_v18, %v382_v19 }
  0x23   : > { %271 = vmatpush.bf16.msra.mxu0 %v260_v17 }
  0x24   : > { %284 = vmatpush.bf16.msra.mxu1 %v263_v20 }
  0x27   : > { %272 = vmatpush.bf16.msra.mxu0 %v381_v21 }
  0x28   : > { %285 = vmatpush.bf16.msra.mxu1 %v385_v22 }
  0x2a   : > { %394 = vmatmul.msk.bf16.vlgmr.msra.gmra.mxu0 %vm251_vm2, %v222_v23 }
  0x2b   : > { %395 = vmatmul.msk.bf16.vlgmr.msra.gmra.mxu1 %vm251_vm2, %v222_v23 }
  0x91   : > { %v231_v24 = vpop.permute.xlu0 %230 }
  0xa7   : > { %v274_v25 = vpop.f32.mrf.mxu0 }
  0xa8   : > { %v275_v26 = vadd.f32 %v274_v25, %v231_v24  ;;  %v287_v27 = vpop.f32.mrf.mxu1 }
  0xa9   : > { %v288_v28 = vadd.f32 %v287_v27, %v231_v24 }
  0xaa   : > { %v293_v29 = vmin.f32 %v275_v26, 0.0  ;;  %vm291_vm3 = vcmp.gt.f32.partialorder %v275_v26, 0.0 }
  0xab   : > { %v294_v30 = vmin.f32 %v288_v28, 0.0  ;;  %vm292_vm4 = vcmp.gt.f32.partialorder %v288_v28, 0.0 }
  0xac   : > { %v295_v31 = vmul.f32 1.442695, %v293_v29 }
  0xad   : > { %v297_v32 = vmul.f32 1.442695, %v294_v30 }
  0xae   : > { %432 = vpow2.f32 %v295_v31 }
  0xaf   : > { %434 = vpow2.f32 %v297_v32  ;;  %v276_v33 = vpop.f32.mrf.mxu0 }
  0xb0   : > { %v289_v34 = vpop.f32.mrf.mxu1 }
  0xb4   : > { %v433_v35 = vpop.eup %432 }
  0xb5   : > { %v435_v36 = vpop.eup %434  ;;  %v396_v37 = vadd.f32 -1.0, %v433_v35 }
  0xb6   : > { %v397_v38 = vadd.f32 -1.0, %v435_v36 }
  0xb7   : > { %v301_v39 = vsel %vm291_vm3, %v275_v26, %v396_v37 }
  0xb8   : > { %v302_v40 = vsel %vm292_vm4, %v288_v28, %v397_v38 }
  0xb9   : > { %v303_v41 = vpack.c.bf16 %v302_v40, %v301_v39 }
  0xbb   : > { %304 = vst [vmem:[%s219_s11] sm:$0xff] %v303_v41 }
  0xbc PF: > { %p10_p9 = scmp.ge.s32.totalorder %s499_s16, 4   ;;  %s544_s12 = smov %s454_s13 }
  0xbd   : > { %s545_s13 = smov %s508_s19  ;;  %s546_s14 = smov %s499_s16 }
  0xbe   :  { %12 = sbr.rel (!%p10_p9) target bundleno = 2 (0x2), region = 105 }

// kernel: pix2vox_sharp_forward.7
= control target key start
LH: loop header
LB: loop body
LE: loop exit
PB: predicated region body
PF: predicated region fallthrough
CT: control target
= control target key end

     0   :  { %v151_v1 = vmov 0   ;;  %vm74_vm0 = vcmask 1043456   ;;  %vm70_vm1 = vcmask 588800   ;;  %s199_s1 = inlined_call_operand.vmem [shape: bf16[72,128], index: 1, kind: input, shape index: {}]   ;;  %s200_s2 = inlined_call_operand.vmem [shape: f32[16,1], index: 2, kind: input, shape index: {}]   ;;  %s201_s0 = inlined_call_operand.vmem [shape: bf16[16,72], index: 0, kind: input, shape index: {}]   ;;  %s202_s3 = inlined_call_operand.vmem [shape: bf16[16,128], index: 3, kind: output, shape index: {}]  }
   0x1   :  { %v25_v0 = vld [vmem:[%s199_s1 + $0x20] sm:$0xf]  ;;  %146 = vset.pattern.permute.xlu0 %v151_v1  ;;  %v139_v6 = vld [vmem:[%s199_s1 + $0x18] sm:$0xff]  ;;  %v27_v7 = vld [vmem:[%s200_s2 + $0x8] sm:$0xff] }
   0x2   :  { %v60_v2 = vunpack.c.l.b16 %v25_v0  ;;  %v26_v3 = vld [vmem:[%s200_s2] sm:$0xff]  ;;  %v138_v8 = vld [vmem:[%s199_s1 + $0x10] sm:$0xff]  ;;  %v137_v9 = vld [vmem:[%s199_s1 + $0x8] sm:$0xff] }
   0x3   :  { %30 = vperm.xlu0 %146, %v26_v3   ;;  %v136_v10 = vld [vmem:[%s199_s1] sm:$0xff] }
   0x4   :  { %v65_v4 = vpack.c.b16 %v60_v2, %v60_v2  ;;  %v135_v11 = vld [vmem:[%s201_s0] sm:$0xff] }
   0x6   :  { %v76_v5 = vsel %vm74_vm0, %v65_v4, 0 }
   0x7   :  { %81 = vmatpush.bf16.msra.mxu0 %v76_v5 }
   0xb   :  { %82 = vmatpush.bf16.msra.mxu0 %v139_v6  ;;  %35 = vperm.xlu0 %146, %v27_v7  }
   0xf   :  { %83 = vmatpush.bf16.msra.mxu0 %v138_v8 }
  0x13   :  { %84 = vmatpush.bf16.msra.mxu0 %v137_v9 }
  0x17   :  { %85 = vmatpush.bf16.msra.mxu0 %v136_v10 }
  0x1a   :  { %132 = vmatmul.msk.bf16.vlgmr.msra.gmra.mxu0 %vm70_vm1, %v135_v11 }
  0x75   :  { %v31_v12 = vpop.permute.xlu0 %30 }
  0x7d   :  { %v36_v17 = vpop.permute.xlu0 %35 }
  0x97   :  { %v87_v13 = vpop.f32.mrf.mxu0 }
  0x98   :  { %v88_v14 = vadd.f32 %v87_v13, %v31_v12 }
  0x9a   :  { %v94_v15 = vmin.f32 %v88_v14, 0.0  ;;  %vm92_vm2 = vcmp.gt.f32.partialorder %v88_v14, 0.0 }
  0x9c   :  { %v96_v16 = vmul.f32 1.442695, %v94_v15 }
  0x9e   :  { %147 = vpow2.f32 %v96_v16 }
  0x9f   :  { %v89_v18 = vpop.f32.mrf.mxu0 }
  0xa0   :  { %v90_v19 = vadd.f32 %v89_v18, %v36_v17 }
  0xa2   :  { %v95_v20 = vmin.f32 %v90_v19, 0.0  ;;  %vm93_vm3 = vcmp.gt.f32.partialorder %v90_v19, 0.0 }
  0xa4   :  { %v98_v21 = vmul.f32 1.442695, %v95_v20  ;;  %v148_v22 = vpop.eup %147 }
  0xa5   :  { %v133_v23 = vadd.f32 -1.0, %v148_v22 }
  0xa6   :  { %149 = vpow2.f32 %v98_v21 }
  0xa7   :  { %v102_v26 = vsel %vm92_vm2, %v88_v14, %v133_v23 }
  0xac   :  { %v150_v24 = vpop.eup %149 }
  0xad   :  { %v134_v25 = vadd.f32 -1.0, %v150_v24 }
  0xaf   :  { %v103_v27 = vsel %vm93_vm3, %v90_v19, %v134_v25 }
  0xb0   :  { %v143_v28 = vpack.c.bf16 %v103_v27, %v102_v26 }
  0xb2   :  { %144 = vst [vmem:[%s202_s3] sm:$0xff] %v143_v28  }

// kernel: pix2vox_sharp_forward.8
= control target key start
LH: loop header
LB: loop body
LE: loop exit
PB: predicated region body
PF: predicated region fallthrough
CT: control target
= control target key end

     0   :  { %v315_v6 = vmov 0   ;;  %vm133_vm0 = vcmask 130048   ;;  %s407_s1 = inlined_call_operand.vmem [shape: bf16[144,128], index: 1, kind: input, shape index: {}]   ;;  %s408_s0 = inlined_call_operand.vmem [shape: bf16[32,144], index: 0, kind: input, shape index: {}]   ;;  %s409_s2 = inlined_call_operand.vmem [shape: f32[32,1], index: 2, kind: input, shape index: {}]   ;;  %s410_s3 = inlined_call_operand.vmem [shape: bf16[32,128], index: 3, kind: output, shape index: {}]  }
   0x1   :  { %v283_v0 = vld [vmem:[%s407_s1 + $0x38] sm:$0xff]  ;;  %v284_v1 = vld [vmem:[%s407_s1 + $0x40] sm:$0xff]  ;;  %v282_v3 = vld [vmem:[%s407_s1 + $0x30] sm:$0xff]  ;;  %306 = vset.pattern.permute.xlu1 %v315_v6  ;;  %305 = vset.pattern.permute.xlu0 %v315_v6 }
   0x2   :  { %v272_v2 = vld [vmem:[%s408_s0 + $0x4] sm:$0xf]  ;;  %140 = vmatpush.bf16.msra.mxu0 %v283_v0  ;;  %296 = vmatpush.bf16.msra.mxu2 %v283_v0  ;;  %v218_v4 = vld [vmem:[%s408_s0 + $0x8] sm:$0xf0]  ;;  %v39_v7 = vld [vmem:[%s409_s2 + $0x10] sm:$0xff] }
   0x3   :  { %166 = vmatpush.bf16.msra.mxu1 %v284_v1  ;;  %v221_v5 = vor.u32 %v272_v2, %v218_v4  ;;  %v281_v8 = vld [vmem:[%s407_s1 + $0x28] sm:$0xff]  ;;  %v37_v9 = vld [vmem:[%s409_s2] sm:$0xff]  ;;  %53 = vperm.xlu1 %306, %v39_v7   ;;  %v40_v11 = vld [vmem:[%s409_s2 + $0x18] sm:$0xff] }
   0x4   :  { %43 = vperm.xlu0 %305, %v37_v9   ;;  %v280_v10 = vld [vmem:[%s407_s1 + $0x20] sm:$0xff]  ;;  %v38_v12 = vld [vmem:[%s409_s2 + $0x8] sm:$0xff]  ;;  %v279_v13 = vld [vmem:[%s407_s1 + $0x18] sm:$0xff] }
   0x5   :  { %v274_v14 = vld [vmem:[%s408_s0 + $0x14] sm:$0xf]  ;;  %v226_v15 = vld [vmem:[%s408_s0 + $0x18] sm:$0xf0]  ;;  %v277_v18 = vld [vmem:[%s407_s1 + $0x8] sm:$0xff] }
   0x6   :  { %141 = vmatpush.bf16.msra.mxu0 %v282_v3  ;;  %297 = vmatpush.bf16.msra.mxu2 %v282_v3  ;;  %v278_v16 = vld [vmem:[%s407_s1 + $0x10] sm:$0xff]  ;;  %v229_v17 = vor.u32 %v274_v14, %v226_v15  ;;  %v276_v19 = vld [vmem:[%s407_s1] sm:$0xff]  ;;  %v273_v21 = vld [vmem:[%s408_s0 + $0x4] sm:$0xf0] }
   0x7   :  { %266 = vmatmul.msk.bf16.vlgmr.msra.gmra.mxu1 %vm133_vm0, %v221_v5  ;;  %v216_v20 = vld [vmem:[%s408_s0] sm:$0xf]  ;;  %v224_v22 = vld [vmem:[%s408_s0 + $0x10] sm:$0xf]  ;;  %v275_v23 = vld [vmem:[%s408_s0 + $0x14] sm:$0xf0] }
   0x8   :  { %v217_v24 = vor.u32 %v273_v21, %v216_v20  ;;  %v225_v25 = vor.u32 %v275_v23, %v224_v22 }
   0xa   :  { %142 = vmatpush.bf16.msra.mxu0 %v281_v8  ;;  %298 = vmatpush.bf16.msra.mxu2 %v281_v8 }
   0xb   :  { %58 = vperm.xlu1 %306, %v40_v11  }
   0xc   :  { %48 = vperm.xlu0 %305, %v38_v12  }
   0xe   :  { %143 = vmatpush.bf16.msra.mxu0 %v280_v10  ;;  %299 = vmatpush.bf16.msra.mxu2 %v280_v10 }
  0x12   :  { %144 = vmatpush.bf16.msra.mxu0 %v279_v13  ;;  %300 = vmatpush.bf16.msra.mxu2 %v279_v13 }
  0x16   :  { %145 = vmatpush.bf16.msra.mxu0 %v278_v16  ;;  %301 = vmatpush.bf16.msra.mxu2 %v278_v16 }
  0x17   :  { %267 = vmatmul.msk.bf16.gmra.mxu1 %vm133_vm0, %v229_v17 }
  0x1a   :  { %146 = vmatpush.bf16.msra.mxu0 %v277_v18  ;;  %302 = vmatpush.bf16.msra.mxu2 %v277_v18 }
  0x1e   :  { %147 = vmatpush.bf16.msra.mxu0 %v276_v19  ;;  %303 = vmatpush.bf16.msra.mxu2 %v276_v19 }
  0x21   :  { %148 = vmatmul.bf16.vlgmr.msra.gmra.mxu0 %v217_v24  ;;  %153 = vmatmul.bf16.vlgmr.msra.gmra.mxu2 %v225_v25 }
  0x75   :  { %v54_v32 = vpop.permute.xlu1 %53 }
  0x76   :  { %v44_v28 = vpop.permute.xlu0 %43 }
  0x7d   :  { %v59_v45 = vpop.permute.xlu1 %58 }
  0x7e   :  { %v49_v37 = vpop.permute.xlu0 %48 }
  0x84   :  { %v168_v26 = vpop.f32.mrf.mxu1 }
  0x8c   :  { %v170_v27 = vpop.f32.mrf.mxu1 }
  0x94   :  { %v173_v34 = vpop.f32.mrf.mxu1 }
  0x9c   :  { %v175_v50 = vpop.f32.mrf.mxu1 }
  0x9e   :  { %v149_v29 = vpop.f32.mrf.mxu0 }
  0x9f   :  { %v150_v30 = vadd.f32 %v149_v29, %v44_v28 }
  0xa1   :  { %v169_v31 = vadd.f32 %v168_v26, %v150_v30 }
  0xa3   :  { %v182_v33 = vmin.f32 %v169_v31, 0.0  ;;  %vm178_vm1 = vcmp.gt.f32.partialorder %v169_v31, 0.0 }
  0xa4   :  { %v154_v35 = vpop.f32.mrf.mxu2 }
  0xa5   :  { %v155_v36 = vadd.f32 %v154_v35, %v54_v32  ;;  %v186_v39 = vmul.f32 1.442695, %v182_v33 }
  0xa6   :  { %v151_v38 = vpop.f32.mrf.mxu0 }
  0xa7   :  { %v174_v40 = vadd.f32 %v173_v34, %v155_v36  ;;  %v152_v41 = vadd.f32 %v151_v38, %v49_v37  ;;  %307 = vpow2.f32 %v186_v39 }
  0xa9   :  { %v184_v42 = vmin.f32 %v174_v40, 0.0  ;;  %v171_v43 = vadd.f32 %v170_v27, %v152_v41  ;;  %vm180_vm3 = vcmp.gt.f32.partialorder %v174_v40, 0.0 }
  0xab   :  { %v183_v44 = vmin.f32 %v171_v43, 0.0  ;;  %v190_v47 = vmul.f32 1.442695, %v184_v42  ;;  %vm179_vm2 = vcmp.gt.f32.partialorder %v171_v43, 0.0 }
  0xac   :  { %v156_v46 = vpop.f32.mrf.mxu2 }
  0xad   :  { %v188_v48 = vmul.f32 1.442695, %v183_v44  ;;  %v157_v49 = vadd.f32 %v156_v46, %v59_v45  ;;  %v308_v52 = vpop.eup %307 }
  0xae   :  { %v268_v55 = vadd.f32 -1.0, %v308_v52 }
  0xaf   :  { %309 = vpow2.f32 %v188_v48  ;;  %v176_v51 = vadd.f32 %v175_v50, %v157_v49 }
  0xb0   :  { %311 = vpow2.f32 %v190_v47  ;;  %v198_v59 = vsel %vm178_vm1, %v169_v31, %v268_v55 }
  0xb1   :  { %v185_v53 = vmin.f32 %v176_v51, 0.0  ;;  %vm181_vm4 = vcmp.gt.f32.partialorder %v176_v51, 0.0 }
  0xb3   :  { %v192_v54 = vmul.f32 1.442695, %v185_v53 }
  0xb5   :  { %v310_v56 = vpop.eup %309  ;;  %313 = vpow2.f32 %v192_v54 }
  0xb6   :  { %v269_v57 = vadd.f32 -1.0, %v310_v56  ;;  %v312_v58 = vpop.eup %311 }
  0xb7   :  { %v270_v62 = vadd.f32 -1.0, %v312_v58 }
  0xb8   :  { %v199_v60 = vsel %vm179_vm2, %v171_v43, %v269_v57 }
  0xb9   :  { %v288_v61 = vpack.c.bf16 %v199_v60, %v198_v59  ;;  %v200_v1 = vsel %vm180_vm3, %v174_v40, %v270_v62 }
  0xbb   :  { %v314_v63 = vpop.eup %313  ;;  %289 = vst [vmem:[%s410_s3] sm:$0xff] %v288_v61  }
  0xbc   :  { %v271_v0 = vadd.f32 -1.0, %v314_v63 }
  0xbe   :  { %v201_v2 = vsel %vm181_vm4, %v176_v51, %v271_v0 }
  0xbf   :  { %v293_v3 = vpack.c.bf16 %v201_v2, %v200_v1 }
  0xc1   :  { %295 = vst [vmem:[%s410_s3 + $0x8] sm:$0xff] %v293_v3  }

// kernel: mul.47
= control target key start
LH: loop header
LB: loop body
LE: loop exit
PB: predicated region body
PF: predicated region fallthrough
CT: control target
= control target key end

     0   :  { %s67_s10 = smov 56   ;;  %s68_s11 = smov 40   ;;  %vm3_vm0 = vcmask 64512   ;;  %vm9_vm1 = vcmask 523712   ;;  %vm15_vm2 = vcmask 458112   ;;  %vm21_vm3 = vcmask 392512   ;;  %s111_s0 = inlined_call_operand.vmem [shape: f32[8,8], index: 0, kind: input, shape index: {}]   ;;  %s112_s1 = inlined_call_operand.vmem [shape: f32[64], index: 1, kind: output, shape index: {}]  }
   0x1   :  { %v53_v0 = vld [vmem:[%s111_s0 + $0x7] sm:$0x1]   ;;  %v55_v1 = vld [vmem:[%s111_s0 + $0x5] sm:$0x1]   ;;  %v57_v2 = vld [vmem:[%s111_s0 + $0x3] sm:$0x1]  }
   0x2   :  { %7 = vrot.lane.b32.xlu0 %v53_v0, %s67_s10  ;;  %19 = vrot.lane.b32.xlu1 %v55_v1, %s68_s11  ;;  %s69_s14 = smov 24   ;;  %v54_v3 = vld [vmem:[%s111_s0 + $0x6] sm:$0x1]   ;;  %v56_v4 = vld [vmem:[%s111_s0 + $0x4] sm:$0x1]   ;;  %s70_s21 = smov 48  }
   0x3   :  { %31 = vrot.lane.b32.xlu2 %v57_v2, %s69_s14  ;;  %v58_v5 = vld [vmem:[%s111_s0 + $0x2] sm:$0x1]   ;;  %s71_s22 = smov 32   ;;  %s72_s23 = smov 16   ;;  %v59_v6 = vld [vmem:[%s111_s0 + $0x1] sm:$0x1]  }
   0x4   :  { %s73_s26 = smov 8   ;;  %v2_v7 = vld [vmem:[%s111_s0] sm:$0x1]   ;;  %vm27_vm4 = vcmask 326912   ;;  %vm33_vm5 = vcmask 261312   ;;  %vm39_vm6 = vcmask 195712  }
   0x5   :  { %4 = vst.msk [vmem:[#allocation0] sm:$0x1] %vm3_vm0, %v2_v7   ;;  %vm45_vm7 = vcmask 130112  }
   0xa   :  { %13 = vrot.lane.b32.xlu0 %v54_v3, %s70_s21  ;;  %25 = vrot.lane.b32.xlu1 %v56_v4, %s71_s22 }
   0xb   :  { %37 = vrot.lane.b32.xlu2 %v58_v5, %s72_s23 }
  0x12   :  { %43 = vrot.lane.b32.xlu0 %v59_v6, %s73_s26 }
  0x5d   :  { %v32_v8 = vpop.permute.xlu2 %31  }
  0x65   :  { %v38_v9 = vpop.permute.xlu2 %37  }
  0x74   :  { %v8_v10 = vpop.permute.xlu0 %7   ;;  %v20_v11 = vpop.permute.xlu1 %19  }
  0x75   :  { %10 = vst.msk [vmem:[#allocation0] sm:$0x1] %vm9_vm1, %v8_v10  }
  0x7c   :  { %v14_v12 = vpop.permute.xlu0 %13   ;;  %v26_v13 = vpop.permute.xlu1 %25  }
  0x7d   :  { %16 = vst.msk [vmem:[#allocation0] sm:$0x1] %vm15_vm2, %v14_v12  }
  0x7e   :  { %22 = vst.msk [vmem:[#allocation0] sm:$0x1] %vm21_vm3, %v20_v11  }
  0x7f   :  { %28 = vst.msk [vmem:[#allocation0] sm:$0x1] %vm27_vm4, %v26_v13  }
  0x80   :  { %34 = vst.msk [vmem:[#allocation0] sm:$0x1] %vm33_vm5, %v32_v8  }
  0x81   :  { %40 = vst.msk [vmem:[#allocation0] sm:$0x1] %vm39_vm6, %v38_v9  }
  0x84   :  { %v44_v14 = vpop.permute.xlu0 %43  }
  0x85   :  { %46 = vst.msk [vmem:[#allocation0] sm:$0x1] %vm45_vm7, %v44_v14  }
  0x8c   :  { %v49_v15 = vld [vmem:[#allocation0] sm:$0x1] }
  0x8d   :  { %52 = vst [vmem:[%s112_s1] sm:$0x1] %v49_v15 }

// kernel: pix2vox_sharp_forward.9
= control target key start
LH: loop header
LB: loop body
LE: loop exit
PB: predicated region body
PF: predicated region fallthrough
CT: control target
= control target key end

     0   :  { %v774_v6 = vmov 0   ;;  %vm371_vm0 = vcmask 392192   ;;  %s1012_s1 = inlined_call_operand.vmem [shape: bf16[432,128], index: 1, kind: input, shape index: {}]   ;;  %s1013_s0 = inlined_call_operand.vmem [shape: bf16[64,432], index: 0, kind: input, shape index: {}]   ;;  %s1014_s2 = inlined_call_operand.vmem [shape: f32[64,1], index: 2, kind: input, shape index: {}]   ;;  %s1015_s3 = inlined_call_operand.vmem [shape: bf16[64,128], index: 3, kind: output, shape index: {}]  }
   0x1   :  { %v727_v0 = vld [vmem:[%s1012_s1 + $0x38] sm:$0xff]  ;;  %v726_v3 = vld [vmem:[%s1012_s1 + $0x30] sm:$0xff]  ;;  %771 = vset.pattern.permute.xlu0 %v774_v6  ;;  %772 = vset.pattern.permute.xlu1 %v774_v6  ;;  %v725_v8 = vld [vmem:[%s1012_s1 + $0x28] sm:$0xff] }
   0x2   :  { %v735_v1 = vld [vmem:[%s1012_s1 + $0x78] sm:$0xff]  ;;  %384 = vmatpush.bf16.msra.mxu0 %v727_v0  ;;  %v734_v4 = vld [vmem:[%s1012_s1 + $0x70] sm:$0xff]  ;;  %773 = vset.pattern.permute.xlu2 %v774_v6  ;;  %v733_v9 = vld [vmem:[%s1012_s1 + $0x68] sm:$0xff] }
   0x3   :  { %v743_v2 = vld [vmem:[%s1012_s1 + $0xb8] sm:$0xff]  ;;  %413 = vmatpush.bf16.msra.mxu1 %v735_v1  ;;  %v742_v5 = vld [vmem:[%s1012_s1 + $0xb0] sm:$0xff]  ;;  %v741_v10 = vld [vmem:[%s1012_s1 + $0xa8] sm:$0xff] }
   0x4   :  { %442 = vmatpush.bf16.msra.mxu2 %v743_v2  ;;  %v746_v7 = vld [vmem:[%s1012_s1 + $0xd0] sm:$0xff]  ;;  %v745_v11 = vld [vmem:[%s1012_s1 + $0xc8] sm:$0xff]  ;;  %v724_v12 = vld [vmem:[%s1012_s1 + $0x20] sm:$0xff] }
   0x5   :  { %476 = vmatpush.bf16.msra.mxu3 %v746_v7  ;;  %v732_v13 = vld [vmem:[%s1012_s1 + $0x60] sm:$0xff]  ;;  %v705_v16 = vld [vmem:[%s1013_s0 + $0xc] sm:$0xf]  ;;  %v540_v17 = vld [vmem:[%s1013_s0 + $0x18] sm:$0xf0] }
   0x6   :  { %385 = vmatpush.bf16.msra.mxu0 %v726_v3  ;;  %v740_v14 = vld [vmem:[%s1012_s1 + $0xa0] sm:$0xff]  ;;  %v723_v19 = vld [vmem:[%s1012_s1 + $0x18] sm:$0xff]  ;;  %v543_v22 = vor.u32 %v705_v16, %v540_v17  ;;  %v722_v23 = vld [vmem:[%s1012_s1 + $0x10] sm:$0xff] }
   0x7   :  { %414 = vmatpush.bf16.msra.mxu1 %v734_v4  ;;  %v744_v15 = vld [vmem:[%s1012_s1 + $0xc0] sm:$0xff]  ;;  %v731_v20 = vld [vmem:[%s1012_s1 + $0x58] sm:$0xff]  ;;  %v730_v24 = vld [vmem:[%s1012_s1 + $0x50] sm:$0xff] }
   0x8   :  { %443 = vmatpush.bf16.msra.mxu2 %v742_v5  ;;  %v85_v18 = vld [vmem:[%s1014_s2] sm:$0xff]  ;;  %v739_v21 = vld [vmem:[%s1012_s1 + $0x98] sm:$0xff]  ;;  %v86_v25 = vld [vmem:[%s1014_s2 + $0x8] sm:$0xff] }
   0x9   :  { %477 = vmatpush.bf16.msra.mxu3 %v745_v11  ;;  %95 = vperm.xlu0 %771, %v85_v18   ;;  %v738_v26 = vld [vmem:[%s1012_s1 + $0x90] sm:$0xff]  ;;  %v721_v28 = vld [vmem:[%s1012_s1 + $0x8] sm:$0xff]  ;;  %v720_v31 = vld [vmem:[%s1012_s1] sm:$0xff] }
   0xa   :  { %386 = vmatpush.bf16.msra.mxu0 %v725_v8  ;;  %v87_v27 = vld [vmem:[%s1014_s2 + $0x10] sm:$0xff]  ;;  %v729_v29 = vld [vmem:[%s1012_s1 + $0x48] sm:$0xff]  ;;  %v728_v32 = vld [vmem:[%s1012_s1 + $0x40] sm:$0xff] }
   0xb   :  { %415 = vmatpush.bf16.msra.mxu1 %v733_v9  ;;  %105 = vperm.xlu1 %772, %v87_v27   ;;  %v737_v30 = vld [vmem:[%s1012_s1 + $0x88] sm:$0xff]  ;;  %v530_v33 = vld [vmem:[%s1013_s0] sm:$0xf]  ;;  %v706_v34 = vld [vmem:[%s1013_s0 + $0xc] sm:$0xf0] }
   0xc   :  { %444 = vmatpush.bf16.msra.mxu2 %v741_v10  ;;  %v704_v35 = vld [vmem:[%s1013_s0 + $0x4] sm:$0xf]  ;;  %v532_v36 = vld [vmem:[%s1013_s0 + $0x10] sm:$0xf0]  ;;  %v538_v38 = vld [vmem:[%s1013_s0 + $0x8] sm:$0xf]  ;;  %v531_v42 = vor.u32 %v706_v34, %v530_v33 }
   0xd   :  { %478 = vmatpush.bf16.msra.mxu3 %v744_v15  ;;  %v736_v37 = vld [vmem:[%s1012_s1 + $0x80] sm:$0xff]  ;;  %v707_v39 = vld [vmem:[%s1013_s0 + $0x14] sm:$0xf0]  ;;  %v709_v40 = vld [vmem:[%s1013_s0 + $0x2c] sm:$0xf]  ;;  %v535_v43 = vor.u32 %v704_v35, %v532_v36 }
   0xe   :  { %387 = vmatpush.bf16.msra.mxu0 %v724_v12  ;;  %v556_v41 = vld [vmem:[%s1013_s0 + $0x38] sm:$0xf0]  ;;  %v539_v44 = vor.u32 %v707_v39, %v538_v38  ;;  %v546_v47 = vld [vmem:[%s1013_s0 + $0x20] sm:$0xf]  ;;  %v710_v48 = vld [vmem:[%s1013_s0 + $0x2c] sm:$0xf0] }
   0xf   :  { %416 = vmatpush.bf16.msra.mxu1 %v732_v13  ;;  %v559_v45 = vor.u32 %v709_v40, %v556_v41  ;;  %v88_v46 = vld [vmem:[%s1014_s2 + $0x18] sm:$0xff]  ;;  %v708_v49 = vld [vmem:[%s1013_s0 + $0x24] sm:$0xf]  ;;  %v548_v50 = vld [vmem:[%s1013_s0 + $0x30] sm:$0xf0]  ;;  %v547_v55 = vor.u32 %v710_v48, %v546_v47 }
  0x10   :  { %445 = vmatpush.bf16.msra.mxu2 %v740_v14  ;;  %700 = vmatmul.msk.bf16.vlgmr.msra.gmra.mxu3 %vm371_vm0, %v543_v22  ;;  %v554_v51 = vld [vmem:[%s1013_s0 + $0x28] sm:$0xf]  ;;  %v711_v52 = vld [vmem:[%s1013_s0 + $0x34] sm:$0xf0]  ;;  %v713_v53 = vld [vmem:[%s1013_s0 + $0x4c] sm:$0xf]  ;;  %v551_v56 = vor.u32 %v708_v49, %v548_v50 }
  0x11   :  { %100 = vperm.xlu0 %771, %v86_v25   ;;  %v572_v54 = vld [vmem:[%s1013_s0 + $0x58] sm:$0xf0]  ;;  %v555_v57 = vor.u32 %v711_v52, %v554_v51  ;;  %v91_v60 = vld [vmem:[%s1014_s2 + $0x30] sm:$0xff]  ;;  %v89_v61 = vld [vmem:[%s1014_s2 + $0x20] sm:$0xff] }
  0x12   :  { %388 = vmatpush.bf16.msra.mxu0 %v723_v19  ;;  %v575_v58 = vor.u32 %v713_v53, %v572_v54  ;;  %v92_v59 = vld [vmem:[%s1014_s2 + $0x38] sm:$0xff]  ;;  %115 = vperm.xlu2 %773, %v89_v61   ;;  %v562_v62 = vld [vmem:[%s1013_s0 + $0x40] sm:$0xf]  ;;  %v90_v63 = vld [vmem:[%s1014_s2 + $0x28] sm:$0xff] }
  0x13   :  { %417 = vmatpush.bf16.msra.mxu1 %v731_v20  ;;  %110 = vperm.xlu1 %772, %v88_v46   ;;  %v714_v0 = vld [vmem:[%s1013_s0 + $0x4c] sm:$0xf0]  ;;  %v712_v1 = vld [vmem:[%s1013_s0 + $0x44] sm:$0xf]  ;;  %v564_v2 = vld [vmem:[%s1013_s0 + $0x50] sm:$0xf0] }
  0x14   :  { %446 = vmatpush.bf16.msra.mxu2 %v739_v21  ;;  %v570_v3 = vld [vmem:[%s1013_s0 + $0x48] sm:$0xf]  ;;  %v715_v4 = vld [vmem:[%s1013_s0 + $0x54] sm:$0xf0]  ;;  %v717_v5 = vld [vmem:[%s1013_s0 + $0x6c] sm:$0xf]  ;;  %v563_v7 = vor.u32 %v714_v0, %v562_v62  ;;  %v567_v8 = vor.u32 %v712_v1, %v564_v2 }
  0x15   :  { %v588_v6 = vld [vmem:[%s1013_s0 + $0x78] sm:$0xf0]  ;;  %v571_v9 = vor.u32 %v715_v4, %v570_v3  ;;  %v578_v11 = vld [vmem:[%s1013_s0 + $0x60] sm:$0xf]  ;;  %v718_v12 = vld [vmem:[%s1013_s0 + $0x6c] sm:$0xf0] }
  0x16   :  { %389 = vmatpush.bf16.msra.mxu0 %v722_v23  ;;  %v591_v10 = vor.u32 %v717_v5, %v588_v6  ;;  %v716_v13 = vld [vmem:[%s1013_s0 + $0x64] sm:$0xf]  ;;  %v580_v14 = vld [vmem:[%s1013_s0 + $0x70] sm:$0xf0]  ;;  %v586_v15 = vld [vmem:[%s1013_s0 + $0x68] sm:$0xf]  ;;  %v579_v17 = vor.u32 %v718_v12, %v578_v11 }
  0x17   :  { %418 = vmatpush.bf16.msra.mxu1 %v730_v24  ;;  %v719_v16 = vld [vmem:[%s1013_s0 + $0x74] sm:$0xf0]  ;;  %v583_v18 = vor.u32 %v716_v13, %v580_v14 }
  0x18   :  { %447 = vmatpush.bf16.msra.mxu2 %v738_v26  ;;  %v587_v19 = vor.u32 %v719_v16, %v586_v15 }
  0x19   :  { %125 = vperm.xlu0 %771, %v91_v60  }
  0x1a   :  { %390 = vmatpush.bf16.msra.mxu0 %v721_v28  ;;  %120 = vperm.xlu2 %773, %v90_v63  }
  0x1b   :  { %419 = vmatpush.bf16.msra.mxu1 %v729_v29  ;;  %130 = vperm.xlu1 %772, %v92_v59  }
  0x1c   :  { %448 = vmatpush.bf16.msra.mxu2 %v737_v30 }
  0x1e   :  { %391 = vmatpush.bf16.msra.mxu0 %v720_v31 }
  0x1f   :  { %420 = vmatpush.bf16.msra.mxu1 %v728_v32 }
  0x20   :  { %449 = vmatpush.bf16.msra.mxu2 %v736_v37  ;;  %701 = vmatmul.msk.bf16.gmra.mxu3 %vm371_vm0, %v559_v45 }
  0x21   :  { %392 = vmatmul.bf16.vlgmr.msra.gmra.mxu0 %v531_v42 }
  0x22   :  { %421 = vmatmul.bf16.vlgmr.msra.gmra.mxu1 %v535_v43 }
  0x23   :  { %450 = vmatmul.bf16.vlgmr.msra.gmra.mxu2 %v539_v44 }
  0x30   :  { %702 = vmatmul.msk.bf16.gmra.mxu3 %vm371_vm0, %v575_v58 }
  0x31   :  { %397 = vmatmul.bf16.gmra.mxu0 %v547_v55 }
  0x32   :  { %426 = vmatmul.bf16.gmra.mxu1 %v551_v56 }
  0x33   :  { %455 = vmatmul.bf16.gmra.mxu2 %v555_v57 }
  0x40   :  { %703 = vmatmul.msk.bf16.gmra.mxu3 %vm371_vm0, %v591_v10 }
  0x41   :  { %402 = vmatmul.bf16.gmra.mxu0 %v563_v7 }
  0x42   :  { %431 = vmatmul.bf16.gmra.mxu1 %v567_v8 }
  0x43   :  { %460 = vmatmul.bf16.gmra.mxu2 %v571_v9 }
  0x51   :  { %407 = vmatmul.bf16.gmra.mxu0 %v579_v17 }
  0x52   :  { %436 = vmatmul.bf16.gmra.mxu1 %v583_v18 }
  0x53   :  { %465 = vmatmul.bf16.gmra.mxu2 %v587_v19 }
  0x6c   :  { %v116_v54 = vpop.permute.xlu2 %115 }
  0x74   :  { %v121_v4 = vpop.permute.xlu2 %120 }
  0x7b   :  { %v96_v21 = vpop.permute.xlu0 %95 }
  0x7d   :  { %v106_v33 = vpop.permute.xlu1 %105 }
  0x83   :  { %v101_v27 = vpop.permute.xlu0 %100 }
  0x85   :  { %v111_v47 = vpop.permute.xlu1 %110 }
  0x93   :  { %v480_v20 = vpop.f32.mrf.mxu3 }
  0x9b   :  { %v482_v25 = vpop.f32.mrf.mxu3 }
  0x9e   :  { %v393_v22 = vpop.f32.mrf.mxu0 }
  0x9f   :  { %v422_v23 = vpop.f32.mrf.mxu1  ;;  %v394_v24 = vadd.f32 %v393_v22, %v96_v21 }
  0xa1   :  { %v423_v28 = vadd.f32 %v422_v23, %v394_v24 }
  0xa3   :  { %v485_v36 = vpop.f32.mrf.mxu3 }
  0xa6   :  { %v451_v26 = vpop.f32.mrf.mxu2  ;;  %v395_v29 = vpop.f32.mrf.mxu0 }
  0xa7   :  { %v424_v30 = vpop.f32.mrf.mxu1  ;;  %v396_v31 = vadd.f32 %v395_v29, %v101_v27  ;;  %v452_v32 = vadd.f32 %v451_v26, %v423_v28  ;;  %v131_v26 = vpop.permute.xlu1 %130 }
  0xa9   :  { %v425_v34 = vadd.f32 %v424_v30, %v396_v31  ;;  %v481_v37 = vadd.f32 %v480_v20, %v452_v32  ;;  %v126_v20 = vpop.permute.xlu0 %125 }
  0xab   :  { %v500_v42 = vmax.f32 %v481_v37, 0.0  ;;  %v487_v51 = vpop.f32.mrf.mxu3 }
  0xae   :  { %v453_v35 = vpop.f32.mrf.mxu2  ;;  %v398_v39 = vpop.f32.mrf.mxu0 }
  0xaf   :  { %v454_v38 = vadd.f32 %v453_v35, %v425_v34  ;;  %v427_v40 = vpop.f32.mrf.mxu1  ;;  %v399_v44 = vadd.f32 %v398_v39, %v106_v33 }
  0xb1   :  { %v483_v41 = vadd.f32 %v482_v25, %v454_v38  ;;  %v428_v48 = vadd.f32 %v427_v40, %v399_v44 }
  0xb3   :  { %v501_v43 = vmax.f32 %v483_v41, 0.0  ;;  %v490_v62 = vpop.f32.mrf.mxu3 }
  0xb5   :  { %v750_v45 = vpack.c.bf16 %v501_v43, %v500_v42 }
  0xb6   :  { %v456_v46 = vpop.f32.mrf.mxu2  ;;  %v400_v49 = vpop.f32.mrf.mxu0 }
  0xb7   :  { %751 = vst [vmem:[%s1015_s3] sm:$0xff] %v750_v45   ;;  %v429_v50 = vpop.f32.mrf.mxu1  ;;  %v401_v52 = vadd.f32 %v400_v49, %v111_v47  ;;  %v457_v53 = vadd.f32 %v456_v46, %v428_v48 }
  0xb9   :  { %v430_v55 = vadd.f32 %v429_v50, %v401_v52  ;;  %v486_v57 = vadd.f32 %v485_v36, %v457_v53 }
  0xbb   :  { %v502_v63 = vmax.f32 %v486_v57, 0.0  ;;  %v492_v10 = vpop.f32.mrf.mxu3 }
  0xbe   :  { %v458_v56 = vpop.f32.mrf.mxu2  ;;  %v403_v59 = vpop.f32.mrf.mxu0 }
  0xbf   :  { %v459_v58 = vadd.f32 %v458_v56, %v430_v55  ;;  %v432_v60 = vpop.f32.mrf.mxu1  ;;  %v404_v1 = vadd.f32 %v403_v59, %v116_v54 }
  0xc1   :  { %v488_v61 = vadd.f32 %v487_v51, %v459_v58  ;;  %v433_v5 = vadd.f32 %v432_v60, %v404_v1 }
  0xc3   :  { %v503_v0 = vmax.f32 %v488_v61, 0.0  ;;  %v495_v23 = vpop.f32.mrf.mxu3 }
  0xc5   :  { %v755_v2 = vpack.c.bf16 %v503_v0, %v502_v63 }
  0xc6   :  { %v461_v3 = vpop.f32.mrf.mxu2  ;;  %v405_v6 = vpop.f32.mrf.mxu0 }
  0xc7   :  { %767 = vst [vmem:[%s1015_s3 + $0x8] sm:$0xff] %v755_v2   ;;  %v434_v7 = vpop.f32.mrf.mxu1  ;;  %v406_v8 = vadd.f32 %v405_v6, %v121_v4  ;;  %v462_v9 = vadd.f32 %v461_v3, %v433_v5 }
  0xc9   :  { %v435_v11 = vadd.f32 %v434_v7, %v406_v8  ;;  %v491_v13 = vadd.f32 %v490_v62, %v462_v9 }
  0xcb   :  { %v504_v18 = vmax.f32 %v491_v13, 0.0  ;;  %v497_v35 = vpop.f32.mrf.mxu3 }
  0xce   :  { %v463_v12 = vpop.f32.mrf.mxu2  ;;  %v408_v15 = vpop.f32.mrf.mxu0 }
  0xcf   :  { %v464_v14 = vadd.f32 %v463_v12, %v435_v11  ;;  %v437_v17 = vpop.f32.mrf.mxu1  ;;  %v409_v22 = vadd.f32 %v408_v15, %v126_v20 }
  0xd1   :  { %v493_v16 = vadd.f32 %v492_v10, %v464_v14  ;;  %v438_v27 = vadd.f32 %v437_v17, %v409_v22 }
  0xd3   :  { %v505_v19 = vmax.f32 %v493_v16, 0.0 }
  0xd5   :  { %v760_v21 = vpack.c.bf16 %v505_v19, %v504_v18 }
  0xd6   :  { %v466_v24 = vpop.f32.mrf.mxu2  ;;  %v410_v25 = vpop.f32.mrf.mxu0 }
  0xd7   :  { %768 = vst [vmem:[%s1015_s3 + $0x10] sm:$0xff] %v760_v21   ;;  %v411_v28 = vadd.f32 %v410_v25, %v131_v26  ;;  %v467_v29 = vadd.f32 %v466_v24, %v438_v27  ;;  %v439_v30 = vpop.f32.mrf.mxu1 }
  0xd9   :  { %v440_v31 = vadd.f32 %v439_v30, %v411_v28  ;;  %v496_v33 = vadd.f32 %v495_v23, %v467_v29 }
  0xdb   :  { %v506_v37 = vmax.f32 %v496_v33, 0.0 }
  0xde   :  { %v468_v32 = vpop.f32.mrf.mxu2 }
  0xdf   :  { %v469_v34 = vadd.f32 %v468_v32, %v440_v31 }
  0xe1   :  { %v498_v36 = vadd.f32 %v497_v35, %v469_v34 }
  0xe3   :  { %v507_v38 = vmax.f32 %v498_v36, 0.0 }
  0xe5   :  { %v765_v39 = vpack.c.bf16 %v507_v38, %v506_v37 }
  0xe7   :  { %769 = vst [vmem:[%s1015_s3 + $0x18] sm:$0xff] %v765_v39  }

// kernel: mul.52
= control target key start
LH: loop header
LB: loop body
LE: loop exit
PB: predicated region body
PF: predicated region fallthrough
CT: control target
= control target key end

     0   :  { %s37_s8 = smov 8   ;;  %s38_s9 = smov 16   ;;  %vm7_vm0 = vcmask 64512   ;;  %vm13_vm1 = vcmask 261312   ;;  %vm19_vm2 = vcmask 195712   ;;  %vm25_vm3 = vcmask 130112   ;;  %s55_s0 = inlined_call_operand.vmem [shape: f32[4,8], index: 0, kind: input, shape index: {}]   ;;  %s56_s1 = inlined_call_operand.vmem [shape: f32[32], index: 1, kind: output, shape index: {}]  }
   0x1   :  { %v4_v0 = vld [vmem:[%s55_s0] sm:$0xf]  ;;  %s36_s0 = smov 24  }
   0x2   :  { %5 = vst [vmem:[#allocation1] sm:$0xf] %v4_v0 }
   0x9   :  { %v10_v1 = vld [vmem:[#allocation1 + $0x3] sm:$0x1]   ;;  %v22_v2 = vld [vmem:[#allocation1 + $0x1] sm:$0x1]   ;;  %v16_v3 = vld [vmem:[#allocation1 + $0x2] sm:$0x1]  }
   0xa   :  { %11 = vrot.lane.b32.xlu0 %v10_v1, %s36_s0  ;;  %23 = vrot.lane.b32.xlu1 %v22_v2, %s37_s8  ;;  %v6_v4 = vld [vmem:[#allocation1] sm:$0x1]  }
   0xb   :  { %8 = vst.msk [vmem:[#allocation0] sm:$0x1] %vm7_vm0, %v6_v4  }
  0x12   :  { %17 = vrot.lane.b32.xlu0 %v16_v3, %s38_s9 }
  0x7c   :  { %v12_v5 = vpop.permute.xlu0 %11   ;;  %v24_v6 = vpop.permute.xlu1 %23  }
  0x7d   :  { %14 = vst.msk [vmem:[#allocation0] sm:$0x1] %vm13_vm1, %v12_v5  }
  0x84   :  { %v18_v7 = vpop.permute.xlu0 %17  }
  0x85   :  { %20 = vst.msk [vmem:[#allocation0] sm:$0x1] %vm19_vm2, %v18_v7  }
  0x86   :  { %26 = vst.msk [vmem:[#allocation0] sm:$0x1] %vm25_vm3, %v24_v6  }
  0x8d   :  { %v29_v8 = vld [vmem:[#allocation0] sm:$0x1] }
  0x8e   :  { %32 = vst [vmem:[%s56_s1] sm:$0x1] %v29_v8 }

// kernel: pix2vox_sharp_forward.10
= control target key start
LH: loop header
LB: loop body
LE: loop exit
PB: predicated region body
PF: predicated region fallthrough
CT: control target
= control target key end

     0   :  { %vm176_vm0 = vcmask 1043456   ;;  %v349_v5 = vmov 0   ;;  %vm169_vm1 = vcmask 719872   ;;  %s454_s1 = inlined_call_operand.vmem [shape: bf16[216,128], index: 1, kind: input, shape index: {}]   ;;  %s455_s2 = inlined_call_operand.vmem [shape: f32[32,1], index: 2, kind: input, shape index: {}]   ;;  %s456_s0 = inlined_call_operand.vmem [shape: bf16[32,216], index: 0, kind: input, shape index: {}]   ;;  %s457_s3 = inlined_call_operand.vmem [shape: bf16[32,128], index: 3, kind: output, shape index: {}]  }
   0x1   :  { %v315_v0 = vld [vmem:[%s454_s1 + $0x38] sm:$0xff]  ;;  %v45_v1 = vld [vmem:[%s454_s1 + $0x68] sm:$0xf]  ;;  %v314_v3 = vld [vmem:[%s454_s1 + $0x30] sm:$0xff]  ;;  %348 = vset.pattern.permute.xlu1 %v349_v5  ;;  %347 = vset.pattern.permute.xlu0 %v349_v5 }
   0x2   :  { %v141_v2 = vunpack.c.l.b16 %v45_v1  ;;  %180 = vmatpush.bf16.msra.mxu0 %v315_v0  ;;  %332 = vmatpush.bf16.msra.mxu2 %v315_v0  ;;  %v320_v7 = vld [vmem:[%s454_s1 + $0x60] sm:$0xff]  ;;  %v313_v8 = vld [vmem:[%s454_s1 + $0x28] sm:$0xff]  ;;  %v48_v9 = vld [vmem:[%s455_s2 + $0x10] sm:$0xff] }
   0x3   :  { %v46_v10 = vld [vmem:[%s455_s2] sm:$0xff]  ;;  %62 = vperm.xlu1 %348, %v48_v9   ;;  %v319_v11 = vld [vmem:[%s454_s1 + $0x58] sm:$0xff]  ;;  %v47_v14 = vld [vmem:[%s455_s2 + $0x8] sm:$0xff] }
   0x4   :  { %v155_v4 = vpack.c.b16 %v141_v2, %v141_v2  ;;  %52 = vperm.xlu0 %347, %v46_v10   ;;  %v312_v12 = vld [vmem:[%s454_s1 + $0x20] sm:$0xff]  ;;  %v49_v13 = vld [vmem:[%s455_s2 + $0x18] sm:$0xff]  ;;  %v318_v15 = vld [vmem:[%s454_s1 + $0x50] sm:$0xff] }
   0x5   :  { %v311_v16 = vld [vmem:[%s454_s1 + $0x18] sm:$0xff]  ;;  %v317_v17 = vld [vmem:[%s454_s1 + $0x48] sm:$0xff]  ;;  %v310_v18 = vld [vmem:[%s454_s1 + $0x10] sm:$0xff] }
   0x6   :  { %v178_v6 = vsel %vm176_vm0, %v155_v4, 0  ;;  %181 = vmatpush.bf16.msra.mxu0 %v314_v3  ;;  %333 = vmatpush.bf16.msra.mxu2 %v314_v3  ;;  %v316_v19 = vld [vmem:[%s454_s1 + $0x40] sm:$0xff]  ;;  %v309_v20 = vld [vmem:[%s454_s1 + $0x8] sm:$0xff]  ;;  %v306_v21 = vld [vmem:[%s456_s0 + $0x14] sm:$0xf] }
   0x7   :  { %340 = vmatpush.bf16.msra.mxu3 %v178_v6  ;;  %201 = vmatpush.bf16.msra.mxu1 %v178_v6  ;;  %v246_v22 = vld [vmem:[%s456_s0 + $0x18] sm:$0xf0]  ;;  %v304_v23 = vld [vmem:[%s456_s0 + $0x4] sm:$0xf]  ;;  %v238_v24 = vld [vmem:[%s456_s0 + $0x8] sm:$0xf0] }
   0x8   :  { %v249_v25 = vor.u32 %v306_v21, %v246_v22  ;;  %v308_v26 = vld [vmem:[%s454_s1] sm:$0xff]  ;;  %v305_v28 = vld [vmem:[%s456_s0 + $0x4] sm:$0xf0]  ;;  %v241_v29 = vor.u32 %v304_v23, %v238_v24  ;;  %v244_v30 = vld [vmem:[%s456_s0 + $0x10] sm:$0xf] }
   0x9   :  { %v236_v27 = vld [vmem:[%s456_s0] sm:$0xf]  ;;  %v307_v31 = vld [vmem:[%s456_s0 + $0x14] sm:$0xf0] }
   0xa   :  { %182 = vmatpush.bf16.msra.mxu0 %v313_v8  ;;  %334 = vmatpush.bf16.msra.mxu2 %v313_v8  ;;  %v237_v32 = vor.u32 %v305_v28, %v236_v27  ;;  %v245_v33 = vor.u32 %v307_v31, %v244_v30 }
   0xb   :  { %341 = vmatpush.bf16.msra.mxu3 %v320_v7  ;;  %202 = vmatpush.bf16.msra.mxu1 %v320_v7 }
   0xc   :  { %67 = vperm.xlu1 %348, %v49_v13   ;;  %57 = vperm.xlu0 %347, %v47_v14  }
   0xe   :  { %183 = vmatpush.bf16.msra.mxu0 %v312_v12  ;;  %335 = vmatpush.bf16.msra.mxu2 %v312_v12 }
   0xf   :  { %342 = vmatpush.bf16.msra.mxu3 %v319_v11  ;;  %203 = vmatpush.bf16.msra.mxu1 %v319_v11 }
  0x12   :  { %184 = vmatpush.bf16.msra.mxu0 %v311_v16  ;;  %336 = vmatpush.bf16.msra.mxu2 %v311_v16 }
  0x13   :  { %343 = vmatpush.bf16.msra.mxu3 %v318_v15  ;;  %204 = vmatpush.bf16.msra.mxu1 %v318_v15 }
  0x16   :  { %185 = vmatpush.bf16.msra.mxu0 %v310_v18  ;;  %337 = vmatpush.bf16.msra.mxu2 %v310_v18 }
  0x17   :  { %344 = vmatpush.bf16.msra.mxu3 %v317_v17  ;;  %205 = vmatpush.bf16.msra.mxu1 %v317_v17 }
  0x1a   :  { %186 = vmatpush.bf16.msra.mxu0 %v309_v20  ;;  %338 = vmatpush.bf16.msra.mxu2 %v309_v20 }
  0x1b   :  { %345 = vmatpush.bf16.msra.mxu3 %v316_v19  ;;  %206 = vmatpush.bf16.msra.mxu1 %v316_v19 }
  0x1e   :  { %303 = vmatmul.msk.bf16.vlgmr.msra.gmra.mxu3 %vm169_vm1, %v249_v25  ;;  %187 = vmatpush.bf16.msra.mxu0 %v308_v26 }
  0x1f   :  { %302 = vmatmul.msk.bf16.vlgmr.msra.gmra.mxu1 %vm169_vm1, %v241_v29  ;;  %339 = vmatpush.bf16.msra.mxu2 %v308_v26 }
  0x21   :  { %188 = vmatmul.bf16.vlgmr.msra.gmra.mxu0 %v237_v32 }
  0x22   :  { %193 = vmatmul.bf16.vlgmr.msra.gmra.mxu2 %v245_v33 }
  0x75   :  { %v63_v37 = vpop.permute.xlu1 %62 }
  0x76   :  { %v53_v34 = vpop.permute.xlu0 %52 }
  0x7e   :  { %v58_v41 = vpop.permute.xlu0 %57  ;;  %v68_v50 = vpop.permute.xlu1 %67 }
  0x9c   :  { %v208_v36 = vpop.f32.mrf.mxu1 }
  0x9e   :  { %v189_v35 = vpop.f32.mrf.mxu0 }
  0x9f   :  { %v190_v38 = vadd.f32 %v189_v35, %v53_v34 }
  0xa1   :  { %v213_v39 = vpop.f32.mrf.mxu3  ;;  %v209_v43 = vadd.f32 %v208_v36, %v190_v38 }
  0xa3   :  { %v218_v48 = vmax.f32 %v209_v43, 0.0 }
  0xa4   :  { %v210_v45 = vpop.f32.mrf.mxu1 }
  0xa5   :  { %v194_v40 = vpop.f32.mrf.mxu2 }
  0xa6   :  { %v191_v42 = vpop.f32.mrf.mxu0  ;;  %v195_v47 = vadd.f32 %v194_v40, %v63_v37 }
  0xa7   :  { %v192_v44 = vadd.f32 %v191_v42, %v58_v41 }
  0xa8   :  { %v214_v53 = vadd.f32 %v213_v39, %v195_v47 }
  0xa9   :  { %v211_v46 = vadd.f32 %v210_v45, %v192_v44  ;;  %v215_v55 = vpop.f32.mrf.mxu3 }
  0xaa   :  { %v220_v57 = vmax.f32 %v214_v53, 0.0 }
  0xab   :  { %v219_v49 = vmax.f32 %v211_v46, 0.0 }
  0xad   :  { %v324_v51 = vpack.c.bf16 %v219_v49, %v218_v48  ;;  %v196_v52 = vpop.f32.mrf.mxu2 }
  0xae   :  { %v197_v54 = vadd.f32 %v196_v52, %v68_v50 }
  0xaf   :  { %325 = vst [vmem:[%s457_s3] sm:$0xff] %v324_v51  }
  0xb0   :  { %v216_v56 = vadd.f32 %v215_v55, %v197_v54 }
  0xb2   :  { %v221_v58 = vmax.f32 %v216_v56, 0.0 }
  0xb4   :  { %v329_v59 = vpack.c.bf16 %v221_v58, %v220_v57 }
  0xb6   :  { %331 = vst [vmem:[%s457_s3 + $0x8] sm:$0xff] %v329_v59  }

// kernel: mul.57
= control target key start
LH: loop header
LB: loop body
LE: loop exit
PB: predicated region body
PF: predicated region fallthrough
CT: control target
= control target key end

     0   :  { %vm7_vm0 = vcmask 64512   ;;  %vm13_vm1 = vcmask 130112   ;;  %s39_s0 = inlined_call_operand.vmem [shape: f32[2,8], index: 0, kind: input, shape index: {}]   ;;  %s40_s1 = inlined_call_operand.vmem [shape: f32[16], index: 1, kind: output, shape index: {}]  }
   0x1   :  { %v4_v0 = vld [vmem:[%s39_s0] sm:$0x3]  ;;  %s22_s0 = smov 8  }
   0x2   :  { %5 = vst [vmem:[#allocation1] sm:$0x3] %v4_v0 }
   0x9   :  { %v10_v1 = vld [vmem:[#allocation1 + $0x1] sm:$0x1]   ;;  %v6_v2 = vld [vmem:[#allocation1] sm:$0x1]  }
   0xa   :  { %11 = vrot.lane.b32.xlu0 %v10_v1, %s22_s0  ;;  %8 = vst.msk [vmem:[#allocation0] sm:$0x1] %vm7_vm0, %v6_v2  }
  0x7c   :  { %v12_v3 = vpop.permute.xlu0 %11  }
  0x7d   :  { %14 = vst.msk [vmem:[#allocation0] sm:$0x1] %vm13_vm1, %v12_v3  }
  0x84   :  { %v17_v4 = vld [vmem:[#allocation0] sm:$0x1] }
  0x85   :  { %20 = vst [vmem:[%s40_s1] sm:$0x1] %v17_v4 }

// kernel: pix2vox_sharp_forward.11
= control target key start
LH: loop header
LB: loop body
LE: loop exit
PB: predicated region body
PF: predicated region fallthrough
CT: control target
= control target key end

     0   :  { %s1204_s0 = inlined_call_operand.vmem [shape: bf16[16,108], index: 0, kind: input, shape index: {}]   ;;  %s1205_s1 = inlined_call_operand.vmem [shape: bf16[108,1024], index: 1, kind: input, shape index: {}]   ;;  %s1206_s2 = inlined_call_operand.vmem [shape: f32[16,1], index: 2, kind: input, shape index: {}]   ;;  %s1207_s3 = inlined_call_operand.vmem [shape: f32[2], index: 3, kind: input, shape index: {}]   ;;  %s1208_s4 = inlined_call_operand.<no memory space> [shape: f32[1], index: 4, kind: input, shape index: {}]   ;;  %s1209_s5 = inlined_call_operand.vmem [shape: f32[8,1024], index: 5, kind: output, shape index: {}]  }
   0x1   :  { %10 = sst [smem:[#allocation2]] %s1208_s4 }
   0x2   :  { %11 = vsyncpa [#allocation5], 0  ;;  %s998_s20 = smov 0   ;;  %s1000_s21 = smov 0  }
   0x3   :  { %s1002_s22 = smov 0  }
   0x4 LB: > { %s701_s4 = sadd.s32 4294967295, %s961_s22   ;;  %s1015_s23 = sadd.s32 1, %s961_s22   ;;  %s961_s22 = sphi %s1002_s22, %s1214_s22   ;;  %s957_s21 = sphi %s1000_s21, %s1213_s21   ;;  %s953_s20 = sphi %s998_s20, %s1212_s20  }
   0x5   : > { %s42_s24 = ssub.s32 %s961_s22, %s1015_s23  ;;  %s45_s25 = sadd.s32 1, %s957_s21 }
   0x6   : > { %p43_p0 = scmp.eq.s32.totalorder %s42_s24, 0  ;;  %p52_p1 = scmp.ne.s32.totalorder %s957_s21, %s953_s20 }
   0x7   : > { %p53_p2 = scmp.eq.s32.totalorder %s961_s22, 0  ;;  %p703_p3 = scmp.ge.s32.totalorder %s961_s22, 1 }
   0x8   : > { %s1025_s26 = scalar_select %p43_p0, %s957_s21, %s45_s25  }
   0x9   : > { %p54_p4 = por %p53_p2, %p52_p1  ;;  %p158_p5 = scmp.lt.s32.totalorder %s961_s22, 3 }
   0xa   : > { %p1030_p6 = scmp.eq.s32.totalorder %s701_s4, 0  ;;  %s176_s6 = sshll.u32 %s1207_s3, 4  ;;  %s177_s6 = int_to_ptr.vmem [resolvable:$true] %s176_s6 }
   0xb   : > { %p1034_p7 = pnand %p703_p3, %p158_p5  ;;  %s963_s7 = smov [#allocation4]  }
   0xc   : > { %p705_p10 = scmp.ge.s32.totalorder %s961_s22, 2 }
   0xd   : > { %p871_p8 = pneg %p1034_p7 }
   0xe   : > { %186 = sbr.rel (%p705_p10) target bundleno = 51 (0x33), region = 32 }
   0xf   : > { %p872_p9 = pnand %p1030_p6, %p871_p8 }
  0x11   : > { %874 = dma.vmem_to_smem (!%p872_p9), %s177_s6, 16, %s963_s7, [#allocation5]  }
  0x13   : > { %189 = sbr.rel (!%p54_p4) target bundleno = 51 (0x33), region = 36  ;;  %s191_s8 = sand.u32 (%p54_p4), 1, %s957_s21  }
  0x14   : > { %s835_s9 = sshll.u32 (%p54_p4), %s961_s22, 4  ;;  %s865_s10 = smul.u32 (%p54_p4), 224, %s191_s8 }
  0x15   : > { %s1051_s13 = scalar_lea.vmem (%p54_p4), %s1205_s1, %s835_s9 }
  0x16   : > { %v209_v0 = vld [vmem:[%s1051_s13] sm:$0xff] (%p54_p4)  ;;  %v211_v1 = vld [vmem:[%s1051_s13 + $0x8] sm:$0xff] (%p54_p4)  ;;  %s1056_s14 = scalar_lea.vmem (%p54_p4), [#allocation3], %s865_s10 }
  0x17   : > { %v213_v2 = vld [vmem:[%s1051_s13 + $0x20] sm:$0xff] (%p54_p4)  ;;  %210 = vst [vmem:[%s1056_s14] sm:$0xff] (%p54_p4), %v209_v0  ;;  %v215_v3 = vld [vmem:[%s1051_s13 + $0x28] sm:$0xff] (%p54_p4) }
  0x18   : > { %212 = vst [vmem:[%s1056_s14 + $0x8] sm:$0xff] %v211_v1  ;;  %v217_v4 = vld [vmem:[%s1051_s13 + $0x40] sm:$0xff]  ;;  %v219_v5 = vld [vmem:[%s1051_s13 + $0x48] sm:$0xff] }
  0x19   : > { %214 = vst [vmem:[%s1056_s14 + $0x10] sm:$0xff] %v213_v2  ;;  %v221_v6 = vld [vmem:[%s1051_s13 + $0x60] sm:$0xff]  ;;  %v223_v7 = vld [vmem:[%s1051_s13 + $0x68] sm:$0xff] }
  0x1a   : > { %216 = vst [vmem:[%s1056_s14 + $0x18] sm:$0xff] %v215_v3  ;;  %v225_v8 = vld [vmem:[%s1051_s13 + $0x80] sm:$0xff]  ;;  %v227_v9 = vld [vmem:[%s1051_s13 + $0x88] sm:$0xff] }
  0x1b   : > { %218 = vst [vmem:[%s1056_s14 + $0x20] sm:$0xff] %v217_v4  ;;  %v229_v10 = vld [vmem:[%s1051_s13 + $0xa0] sm:$0xff]  ;;  %v231_v11 = vld [vmem:[%s1051_s13 + $0xa8] sm:$0xff] }
  0x1c   : > { %220 = vst [vmem:[%s1056_s14 + $0x28] sm:$0xff] %v219_v5  ;;  %v233_v12 = vld [vmem:[%s1051_s13 + $0xc0] sm:$0xff]  ;;  %v235_v13 = vld [vmem:[%s1051_s13 + $0xc8] sm:$0xff] }
  0x1d   : > { %222 = vst [vmem:[%s1056_s14 + $0x30] sm:$0xff] %v221_v6  ;;  %v237_v14 = vld [vmem:[%s1051_s13 + $0xe0] sm:$0xff]  ;;  %v239_v15 = vld [vmem:[%s1051_s13 + $0xe8] sm:$0xff] }
  0x1e   : > { %224 = vst [vmem:[%s1056_s14 + $0x38] sm:$0xff] %v223_v7  ;;  %v241_v16 = vld [vmem:[%s1051_s13 + $0x100] sm:$0xff]  ;;  %v243_v17 = vld [vmem:[%s1051_s13 + $0x108] sm:$0xff] }
  0x1f   : > { %226 = vst [vmem:[%s1056_s14 + $0x40] sm:$0xff] %v225_v8  ;;  %v245_v18 = vld [vmem:[%s1051_s13 + $0x120] sm:$0xff]  ;;  %v247_v19 = vld [vmem:[%s1051_s13 + $0x128] sm:$0xff] }
  0x20   : > { %228 = vst [vmem:[%s1056_s14 + $0x48] sm:$0xff] %v227_v9  ;;  %v249_v20 = vld [vmem:[%s1051_s13 + $0x140] sm:$0xff]  ;;  %v251_v21 = vld [vmem:[%s1051_s13 + $0x148] sm:$0xff] }
  0x21   : > { %230 = vst [vmem:[%s1056_s14 + $0x50] sm:$0xff] %v229_v10  ;;  %v253_v22 = vld [vmem:[%s1051_s13 + $0x160] sm:$0xff]  ;;  %v255_v23 = vld [vmem:[%s1051_s13 + $0x168] sm:$0xff] }
  0x22   : > { %232 = vst [vmem:[%s1056_s14 + $0x58] sm:$0xff] %v231_v11  ;;  %v257_v24 = vld [vmem:[%s1051_s13 + $0x180] sm:$0xff]  ;;  %v259_v25 = vld [vmem:[%s1051_s13 + $0x188] sm:$0xff] }
  0x23   : > { %234 = vst [vmem:[%s1056_s14 + $0x60] sm:$0xff] %v233_v12  ;;  %v261_v26 = vld [vmem:[%s1051_s13 + $0x1a0] sm:$0xff]  ;;  %v263_v27 = vld [vmem:[%s1051_s13 + $0x1a8] sm:$0xff] }
  0x24   : > { %236 = vst [vmem:[%s1056_s14 + $0x68] sm:$0xff] %v235_v13 }
  0x25   : > { %238 = vst [vmem:[%s1056_s14 + $0x70] sm:$0xff] %v237_v14 }
  0x26   : > { %240 = vst [vmem:[%s1056_s14 + $0x78] sm:$0xff] %v239_v15 }
  0x27   : > { %242 = vst [vmem:[%s1056_s14 + $0x80] sm:$0xff] %v241_v16 }
  0x28   : > { %244 = vst [vmem:[%s1056_s14 + $0x88] sm:$0xff] %v243_v17 }
  0x29   : > { %246 = vst [vmem:[%s1056_s14 + $0x90] sm:$0xff] %v245_v18 }
  0x2a   : > { %248 = vst [vmem:[%s1056_s14 + $0x98] sm:$0xff] %v247_v19 }
  0x2b   : > { %250 = vst [vmem:[%s1056_s14 + $0xa0] sm:$0xff] %v249_v20 }
  0x2c   : > { %252 = vst [vmem:[%s1056_s14 + $0xa8] sm:$0xff] %v251_v21 }
  0x2d   : > { %254 = vst [vmem:[%s1056_s14 + $0xb0] sm:$0xff] %v253_v22 }
  0x2e   : > { %256 = vst [vmem:[%s1056_s14 + $0xb8] sm:$0xff] %v255_v23 }
  0x2f   : > { %258 = vst [vmem:[%s1056_s14 + $0xc0] sm:$0xff] %v257_v24 }
  0x30   : > { %260 = vst [vmem:[%s1056_s14 + $0xc8] sm:$0xff] %v259_v25 }
  0x31   : > { %262 = vst [vmem:[%s1056_s14 + $0xd0] sm:$0xff] %v261_v26 }
  0x32   : > { %264 = vst [vmem:[%s1056_s14 + $0xd8] sm:$0xff] %v263_v27 }
  0x33 PF: > { %273 = sbr.rel (%p1034_p7) target bundleno = 264 (0x108), region = 59  ;;  %s276_s15 = sand.u32 (!%p1034_p7), 1, %s953_s20  }
  0x34   : > { %s866_s16 = smul.u32 (!%p1034_p7), 224, %s276_s15 }
  0x36   : > { %s1114_s17 = scalar_lea.vmem (!%p1034_p7), [#allocation3], %s866_s16 }
  0x38   : > { %948 = dma.done.wait (%p1030_p6), [#allocation5], 16  }
  0x39   : > { %950 = vsyncadd (%p1030_p6), [#allocation5], 4294967280 }
  0x3a   : > { %287 = sfence }
  0x3b   : > { %v814_v28 = vld [vmem:[%s1114_s17 + $0xc0] sm:$0xf]  ;;  %v863_v29 = vld [vmem:[%s1114_s17 + $0xcc] sm:$0x30]  ;;  %vm504_vm0 = vcmask 1045504   ;;  %v964_v52 = vmov 0  }
  0x3c   : > { %v815_v30 = vor.u32 %v863_v29, %v814_v28  ;;  %v861_v31 = vld [vmem:[%s1114_s17 + $0xc4] sm:$0xf]  ;;  %v816_v32 = vld [vmem:[%s1114_s17 + $0xd0] sm:$0x30]  ;;  %v822_v33 = vld [vmem:[%s1114_s17 + $0xc8] sm:$0xf]  ;;  %903 = vset.pattern.permute.xlu0 %v964_v52 }
  0x3d   : > { %v819_v34 = vor.u32 %v861_v31, %v816_v32  ;;  %v864_v35 = vld [vmem:[%s1114_s17 + $0xd4] sm:$0x30]  ;;  %v862_v36 = vld [vmem:[%s1114_s17 + $0xcc] sm:$0xf]  ;;  %v824_v37 = vld [vmem:[%s1114_s17 + $0xd8] sm:$0x30] }
  0x3e   : > { %v506_v38 = vsel %vm504_vm0, %v815_v30, 0  ;;  %v823_v39 = vor.u32 %v864_v35, %v822_v33  ;;  %v827_v40 = vor.u32 %v862_v36, %v824_v37  ;;  %v798_v41 = vld [vmem:[%s1114_s17 + $0xa0] sm:$0xf]  ;;  %v859_v42 = vld [vmem:[%s1114_s17 + $0xac] sm:$0xf0]  ;;  %vm500_vm1 = vcmask 883712  }
  0x3f   : > { %518 = vmatpush.bf16.msra.mxu0 %v506_v38  ;;  %v509_v43 = vsel %vm504_vm0, %v819_v34, 0  ;;  %v799_v44 = vor.u32 %v859_v42, %v798_v41  ;;  %v857_v45 = vld [vmem:[%s1114_s17 + $0xa4] sm:$0xf]  ;;  %v800_v46 = vld [vmem:[%s1114_s17 + $0xb0] sm:$0xf0]  ;;  %s581_s28 = sld [smem:[#allocation4]] }
  0x40   : > { %532 = vmatpush.bf16.msra.mxu1 %v509_v43  ;;  %v512_v47 = vsel %vm504_vm0, %v823_v39, 0  ;;  %v515_v48 = vsel %vm504_vm0, %v827_v40, 0  ;;  %v803_v49 = vor.u32 %v857_v45, %v800_v46  ;;  %v806_v50 = vld [vmem:[%s1114_s17 + $0xa8] sm:$0xf]  ;;  %v860_v51 = vld [vmem:[%s1114_s17 + $0xb4] sm:$0xf0] }
  0x41   : > { %546 = vmatpush.bf16.msra.mxu2 %v512_v47  ;;  %560 = vmatpush.bf16.msra.mxu3 %v515_v48  ;;  %v807_v53 = vor.u32 %v860_v51, %v806_v50  ;;  %v858_v54 = vld [vmem:[%s1114_s17 + $0xac] sm:$0xf]  ;;  %v808_v55 = vld [vmem:[%s1114_s17 + $0xb8] sm:$0xf0]  ;;  %v782_v56 = vld [vmem:[%s1114_s17 + $0x80] sm:$0xf] }
  0x42   : > { %v811_v57 = vor.u32 %v858_v54, %v808_v55  ;;  %v855_v58 = vld [vmem:[%s1114_s17 + $0x8c] sm:$0xf0]  ;;  %v853_v59 = vld [vmem:[%s1114_s17 + $0x84] sm:$0xf]  ;;  %v784_v60 = vld [vmem:[%s1114_s17 + $0x90] sm:$0xf0] }
  0x43   : > { %519 = vmatpush.bf16.msra.mxu0 %v799_v44  ;;  %v783_v61 = vor.u32 %v855_v58, %v782_v56  ;;  %v790_v62 = vld [vmem:[%s1114_s17 + $0x88] sm:$0xf]  ;;  %v856_v63 = vld [vmem:[%s1114_s17 + $0x94] sm:$0xf0]  ;;  %v854_v0 = vld [vmem:[%s1114_s17 + $0x8c] sm:$0xf]  ;;  %v787_v1 = vor.u32 %v853_v59, %v784_v60 }
  0x44   : > { %533 = vmatpush.bf16.msra.mxu1 %v803_v49  ;;  %v792_v2 = vld [vmem:[%s1114_s17 + $0x98] sm:$0xf0]  ;;  %v766_v3 = vld [vmem:[%s1114_s17 + $0x60] sm:$0xf]  ;;  %v851_v4 = vld [vmem:[%s1114_s17 + $0x6c] sm:$0xf0]  ;;  %v791_v5 = vor.u32 %v856_v63, %v790_v62 }
  0x45   : > { %547 = vmatpush.bf16.msra.mxu2 %v807_v53  ;;  %561 = vmatpush.bf16.msra.mxu3 %v811_v57  ;;  %v795_v6 = vor.u32 %v854_v0, %v792_v2  ;;  %v849_v7 = vld [vmem:[%s1114_s17 + $0x64] sm:$0xf]  ;;  %v768_v8 = vld [vmem:[%s1114_s17 + $0x70] sm:$0xf0]  ;;  %v774_v9 = vld [vmem:[%s1114_s17 + $0x68] sm:$0xf]  ;;  %v767_v13 = vor.u32 %v851_v4, %v766_v3 }
  0x46   : > { %v852_v10 = vld [vmem:[%s1114_s17 + $0x74] sm:$0xf0]  ;;  %v850_v11 = vld [vmem:[%s1114_s17 + $0x6c] sm:$0xf]  ;;  %v776_v12 = vld [vmem:[%s1114_s17 + $0x78] sm:$0xf0]  ;;  %v771_v14 = vor.u32 %v849_v7, %v768_v8 }
  0x47   : > { %520 = vmatpush.bf16.msra.mxu0 %v783_v61  ;;  %v750_v15 = vld [vmem:[%s1114_s17 + $0x40] sm:$0xf]  ;;  %v847_v16 = vld [vmem:[%s1114_s17 + $0x4c] sm:$0xf0]  ;;  %v775_v17 = vor.u32 %v852_v10, %v774_v9  ;;  %v779_v18 = vor.u32 %v850_v11, %v776_v12  ;;  %v845_v19 = vld [vmem:[%s1114_s17 + $0x44] sm:$0xf] }
  0x48   : > { %534 = vmatpush.bf16.msra.mxu1 %v787_v1  ;;  %v752_v20 = vld [vmem:[%s1114_s17 + $0x50] sm:$0xf0]  ;;  %v758_v21 = vld [vmem:[%s1114_s17 + $0x48] sm:$0xf]  ;;  %v848_v22 = vld [vmem:[%s1114_s17 + $0x54] sm:$0xf0]  ;;  %v751_v25 = vor.u32 %v847_v16, %v750_v15 }
  0x49   : > { %548 = vmatpush.bf16.msra.mxu2 %v791_v5  ;;  %562 = vmatpush.bf16.msra.mxu3 %v795_v6  ;;  %v846_v23 = vld [vmem:[%s1114_s17 + $0x4c] sm:$0xf]  ;;  %v760_v24 = vld [vmem:[%s1114_s17 + $0x58] sm:$0xf0]  ;;  %v755_v26 = vor.u32 %v845_v19, %v752_v20  ;;  %v734_v27 = vld [vmem:[%s1114_s17 + $0x20] sm:$0xf]  ;;  %v759_v29 = vor.u32 %v848_v22, %v758_v21  ;;  %v582_v6 = vstv %s581_s28 }
  0x4a   : > { %v843_v28 = vld [vmem:[%s1114_s17 + $0x2c] sm:$0xf0]  ;;  %v763_v30 = vor.u32 %v846_v23, %v760_v24  ;;  %v841_v31 = vld [vmem:[%s1114_s17 + $0x24] sm:$0xf]  ;;  %v736_v32 = vld [vmem:[%s1114_s17 + $0x30] sm:$0xf0] }
  0x4b   : > { %521 = vmatpush.bf16.msra.mxu0 %v767_v13  ;;  %v742_v33 = vld [vmem:[%s1114_s17 + $0x28] sm:$0xf]  ;;  %v844_v34 = vld [vmem:[%s1114_s17 + $0x34] sm:$0xf0]  ;;  %v842_v35 = vld [vmem:[%s1114_s17 + $0x2c] sm:$0xf]  ;;  %v735_v37 = vor.u32 %v843_v28, %v734_v27  ;;  %v739_v39 = vor.u32 %v841_v31, %v736_v32 }
  0x4c   : > { %535 = vmatpush.bf16.msra.mxu1 %v771_v14  ;;  %v744_v36 = vld [vmem:[%s1114_s17 + $0x38] sm:$0xf0]  ;;  %v347_v38 = vld [vmem:[%s1206_s2] sm:$0xff]  ;;  %v839_v41 = vld [vmem:[%s1114_s17 + $0xc] sm:$0xf0]  ;;  %v743_v42 = vor.u32 %v844_v34, %v742_v33  ;;  %s832_s29 = sld [smem:[#allocation4 + $0x1]] }
  0x4d   : > { %549 = vmatpush.bf16.msra.mxu2 %v775_v17  ;;  %563 = vmatpush.bf16.msra.mxu3 %v779_v18  ;;  %v718_v40 = vld [vmem:[%s1114_s17] sm:$0xf]  ;;  %v747_v43 = vor.u32 %v842_v35, %v744_v36  ;;  %v837_v44 = vld [vmem:[%s1114_s17 + $0x4] sm:$0xf]  ;;  %v720_v45 = vld [vmem:[%s1114_s17 + $0x10] sm:$0xf0] }
  0x4e   : > { %351 = vperm.xlu0 %903, %v347_v38   ;;  %v726_v46 = vld [vmem:[%s1114_s17 + $0x8] sm:$0xf]  ;;  %v840_v47 = vld [vmem:[%s1114_s17 + $0x14] sm:$0xf0]  ;;  %v838_v48 = vld [vmem:[%s1114_s17 + $0xc] sm:$0xf]  ;;  %v719_v50 = vor.u32 %v839_v41, %v718_v40  ;;  %v723_v51 = vor.u32 %v837_v44, %v720_v45 }
  0x4f   : > { %522 = vmatpush.bf16.msra.mxu0 %v751_v25  ;;  %v728_v49 = vld [vmem:[%s1114_s17 + $0x18] sm:$0xf0]  ;;  %v727_v52 = vor.u32 %v840_v47, %v726_v46  ;;  %v348_v54 = vld [vmem:[%s1206_s2 + $0x8] sm:$0xff]  ;;  %v836_v55 = vld [vmem:[%s1204_s0] sm:$0xff]  ;;  %s597_s30 = sld [smem:[#allocation2]]  ;;  %s710_s6 = sshll.u32 %s701_s4, 2 }
  0x50   : > { %536 = vmatpush.bf16.msra.mxu1 %v755_v26  ;;  %v731_v53 = vor.u32 %v838_v48, %v728_v49  ;;  %p311_p11 = scmp.lt.s32.totalorder %s710_s6, 7 }
  0x51   : > { %550 = vmatpush.bf16.msra.mxu2 %v759_v29  ;;  %564 = vmatpush.bf16.msra.mxu3 %v763_v30 }
  0x52   : > { %v588_v7 = vstv %s832_s29  ;;  %s1216_s6 = smov (!%p311_p11, %s710_s6), 7 }
  0x53   : > { %523 = vmatpush.bf16.msra.mxu0 %v735_v37  ;;  %s711_s22 = sshll.u32 %s1216_s6, 3 }
  0x54   : > { %537 = vmatpush.bf16.msra.mxu1 %v739_v39  ;;  %s314_s8 = scalar_lea.vmem %s1209_s5, %s711_s22 }
  0x55   : > { %551 = vmatpush.bf16.msra.mxu2 %v743_v42  ;;  %565 = vmatpush.bf16.msra.mxu3 %v747_v43  ;;  %v598_v16 = vstv %s597_s30 }
  0x56   : > { %356 = vperm.xlu0 %903, %v348_v54  }
  0x57   : > { %524 = vmatpush.bf16.msra.mxu0 %v719_v50 }
  0x58   : > { %538 = vmatpush.bf16.msra.mxu1 %v723_v51 }
  0x59   : > { %552 = vmatpush.bf16.msra.mxu2 %v727_v52  ;;  %566 = vmatpush.bf16.msra.mxu3 %v731_v53 }
  0x5a   : > { %828 = vmatmul.msk.bf16.vlgmr.msra.gmra.mxu0 %vm500_vm1, %v836_v55 }
  0x5b   : > { %829 = vmatmul.msk.bf16.vlgmr.msra.gmra.mxu1 %vm500_vm1, %v836_v55 }
  0x5c   : > { %830 = vmatmul.msk.bf16.vlgmr.msra.gmra.mxu2 %vm500_vm1, %v836_v55  ;;  %831 = vmatmul.msk.bf16.vlgmr.msra.gmra.mxu3 %vm500_vm1, %v836_v55 }
  0xc0   : > { %v352_v56 = vpop.permute.xlu0 %351 }
  0xc8   : > { %v357_v61 = vpop.permute.xlu0 %356 }
  0xd7   : > { %v526_v57 = vpop.f32.mrf.mxu0 }
  0xd8   : > { %v540_v58 = vpop.f32.mrf.mxu1  ;;  %v527_v59 = vadd.f32 %v526_v57, %v352_v56 }
  0xd9   : > { %v541_v60 = vadd.f32 %v540_v58, %v352_v56 }
  0xda   : > { %v573_v2 = vmax.f32 %v527_v59, 0.0 }
  0xdb   : > { %v574_v3 = vmax.f32 %v541_v60, 0.0 }
  0xdc   : > { %v583_v12 = vmul.f32 %v582_v6, %v573_v2 }
  0xdd   : > { %v584_v13 = vmul.f32 %v582_v6, %v574_v3 }
  0xdf   : > { %v554_v62 = vpop.f32.mrf.mxu2  ;;  %v568_v63 = vpop.f32.mrf.mxu3 }
  0xe0   : > { %v528_v0 = vpop.f32.mrf.mxu0  ;;  %v542_v1 = vpop.f32.mrf.mxu1  ;;  %v555_v10 = vadd.f32 %v554_v62, %v352_v56  ;;  %v569_v11 = vadd.f32 %v568_v63, %v352_v56 }
  0xe1   : > { %v529_v4 = vadd.f32 %v528_v0, %v357_v61  ;;  %v543_v5 = vadd.f32 %v542_v1, %v357_v61 }
  0xe2   : > { %v575_v21 = vmax.f32 %v555_v10, 0.0  ;;  %v576_v22 = vmax.f32 %v569_v11, 0.0 }
  0xe3   : > { %v577_v8 = vmax.f32 %v529_v4, 0.0  ;;  %v578_v9 = vmax.f32 %v543_v5, 0.0 }
  0xe4   : > { %v585_v31 = vmul.f32 %v582_v6, %v575_v21  ;;  %v586_v32 = vmul.f32 %v582_v6, %v576_v22 }
  0xe5   : > { %v589_v14 = vmul.f32 %v588_v7, %v577_v8  ;;  %v590_v15 = vmul.f32 %v588_v7, %v578_v9 }
  0xe7   : > { %v593_v17 = vadd.f32 %v589_v14, %v583_v12  ;;  %v594_v18 = vadd.f32 %v590_v15, %v584_v13  ;;  %v556_v19 = vpop.f32.mrf.mxu2  ;;  %v570_v20 = vpop.f32.mrf.mxu3 }
  0xe8   : > { %v557_v23 = vadd.f32 %v556_v19, %v357_v61  ;;  %v571_v24 = vadd.f32 %v570_v20, %v357_v61 }
  0xe9   : > { %v599_v25 = vadd.f32 %v598_v16, %v593_v17  ;;  %v600_v26 = vadd.f32 %v598_v16, %v594_v18 }
  0xea   : > { %v579_v27 = vmax.f32 %v557_v23, 0.0  ;;  %v580_v28 = vmax.f32 %v571_v24, 0.0 }
  0xeb   : > { %v603_v29 = vsub.f32 0.0, %v599_v25  ;;  %v604_v30 = vsub.f32 0.0, %v600_v26 }
  0xec   : > { %v591_v33 = vmul.f32 %v588_v7, %v579_v27  ;;  %v592_v34 = vmul.f32 %v588_v7, %v580_v28 }
  0xed   : > { %v607_v35 = vmul.f32 1.442695, %v603_v29  ;;  %v609_v36 = vmul.f32 1.442695, %v604_v30 }
  0xee   : > { %v595_v37 = vadd.f32 %v591_v33, %v585_v31  ;;  %v596_v38 = vadd.f32 %v592_v34, %v586_v32 }
  0xef   : > { %904 = vpow2.f32 %v607_v35 }
  0xf0   : > { %906 = vpow2.f32 %v609_v36  ;;  %v601_v39 = vadd.f32 %v598_v16, %v595_v37  ;;  %v602_v40 = vadd.f32 %v598_v16, %v596_v38 }
  0xf2   : > { %v605_v41 = vsub.f32 0.0, %v601_v39  ;;  %v606_v42 = vsub.f32 0.0, %v602_v40 }
  0xf4   : > { %v611_v43 = vmul.f32 1.442695, %v605_v41  ;;  %v613_v44 = vmul.f32 1.442695, %v606_v42 }
  0xf5   : > { %v905_v45 = vpop.eup %904 }
  0xf6   : > { %v907_v46 = vpop.eup %906  ;;  %v615_v47 = vadd.f32 1.0, %v905_v45  ;;  %908 = vpow2.f32 %v611_v43 }
  0xf7   : > { %v616_v48 = vadd.f32 1.0, %v907_v46  ;;  %910 = vpow2.f32 %v613_v44 }
  0xf8   : > { %912 = vrcp.f32 %v615_v47 }
  0xf9   : > { %914 = vrcp.f32 %v616_v48 }
  0xfc   : > { %v909_v49 = vpop.eup %908 }
  0xfd   : > { %v911_v50 = vpop.eup %910  ;;  %v617_v51 = vadd.f32 1.0, %v909_v49 }
  0xfe   : > { %v913_v52 = vpop.eup %912  ;;  %v618_v53 = vadd.f32 1.0, %v911_v50 }
  0xff   : > { %v915_v54 = vpop.eup %914  ;;  %623 = vst [vmem:[%s314_s8] sm:$0xff] %v913_v52  ;;  %916 = vrcp.f32 %v617_v51 }
 0x100   : > { %624 = vst [vmem:[%s314_s8 + $0x8] sm:$0xff] %v915_v54  ;;  %918 = vrcp.f32 %v618_v53 }
 0x105   : > { %v917_v55 = vpop.eup %916 }
 0x106   : > { %v919_v56 = vpop.eup %918  ;;  %625 = vst [vmem:[%s314_s8 + $0x10] sm:$0xff] %v917_v55 }
 0x107   : > { %626 = vst [vmem:[%s314_s8 + $0x18] sm:$0xff] %v919_v56 }
 0x108 PF: > { %p14_p12 = scmp.ge.s32.totalorder %s1015_s23, 4   ;;  %s1212_s20 = smov %s957_s21 }
 0x109   : > { %s1213_s21 = smov %s1025_s26  ;;  %s1214_s22 = smov %s1015_s23 }
 0x10a   :  { %16 = sbr.rel (!%p14_p12) target bundleno = 4 (0x4), region = 103 }
 0x10f   :  { %649 = vsyncpa [#allocation5], 1 }
 0x110   :  { %651 = vsyncpa [#allocation5 + $0x1], 1 }

</bundles_post_ra>
